<compile_context>
chip_gen: v7x
topology: tpu7x:2x2x1
jax: 0.10.0
libtpu: 0.0.40
codegen_flags: <defaults>
</compile_context>

<pallas_src>
import jax
import jax.numpy as jnp
from jax import lax
from jax.experimental import pallas as pl
from jax.experimental.pallas import tpu as pltpu

EPS = 1e-5  # PyTorch BatchNorm default


def _dense_layer_kernel(x_ref,           # (H, W, Cin)          f32  (batch dim squeezed)
                        s1_ref, t1_ref,  # (1, Cin)              f32  folded BN1 scale/shift
                        w1_ref,          # (Cin, Cmid)           bf16 1x1 conv weight * BN2 scale
                        b2_ref,          # (1, Cmid)             f32  folded BN2 bias
                        w2_ref,          # (9*Cmid, G)           bf16 im2col 3x3 weight
                        out_ref,         # (tH, W, Cin+G)        f32  fused concat output
                        pad_ref,         # scratch (tH+2, W+2, Cmid) f32
                        col_ref):        # scratch (tH*W, 9*Cmid)    bf16
    H, W, Cin = x_ref.shape
    tH, _, Cout = out_ref.shape
    Cmid = w1_ref.shape[1]
    G = Cout - Cin

    ht = pl.program_id(1)
    row0 = ht * tH
    row0_aligned = pl.multiple_of(row0, tH)

    s1 = s1_ref[...]
    t1 = t1_ref[...]
    b2 = b2_ref[...]
    w1 = w1_ref[...]

    def bottleneck(x_rows, nrows):
        # BN1 (scale/shift) -> ReLU -> 1x1 conv (BN2 scale folded) -> +bias -> ReLU
        a1 = jnp.maximum(x_rows.reshape(nrows * W, Cin) * s1 + t1, 0.0)       # f32, VPU
        h1 = jnp.dot(a1.astype(jnp.bfloat16), w1,
                     preferred_element_type=jnp.float32)                      # MXU, f32 acc
        return jnp.maximum(h1 + b2, 0.0).reshape(nrows, W, Cmid)

    # ---- one bottleneck matmul for the tile rows + their two 1-row halos ----
    x_tile = x_ref[pl.ds(row0_aligned, tH), :, :]                             # (tH, W, Cin)
    top_row = jnp.maximum(row0 - 1, 0)
    bot_row = jnp.minimum(row0 + tH, H - 1)
    x_top = x_ref[pl.ds(top_row, 1), :, :]                                    # (1, W, Cin)
    x_bot = x_ref[pl.ds(bot_row, 1), :, :]                                    # (1, W, Cin)
    x_all = jnp.concatenate([x_top, x_tile, x_bot], axis=0)                   # (tH+2, W, Cin)
    a2_all = bottleneck(x_all, tH + 2)                                        # (tH+2, W, Cmid)

    # Zero halo rows that fall outside the image (== the conv's zero padding).
    top_ok = (row0 >= 1).astype(jnp.float32)
    bot_ok = (row0 + tH <= H - 1).astype(jnp.float32)
    ridx = lax.broadcasted_iota(jnp.int32, (tH + 2, 1, 1), 0)
    row_mask = jnp.where(ridx == 0, top_ok, 1.0) * jnp.where(ridx == tH + 1, bot_ok, 1.0)
    a2_all = a2_all * row_mask

    # ---- zero-padded activation window (only the side columns need zeroing) ----
    zcol = jnp.zeros((tH + 2, 1, Cmid), jnp.float32)
    pad_ref[:, 0:1, :] = zcol                      # left pad column
    pad_ref[:, W + 1:W + 2, :] = zcol              # right pad column
    pad_ref[:, 1:W + 1, :] = a2_all                # tile rows + halo rows in one store

    # ---- 3x3 conv (pad=1) as ONE im2col matmul over K = 9*Cmid ----
    for t in range(9):
        dy, dx = t // 3, t % 3
        col_ref[:, t * Cmid:(t + 1) * Cmid] = (
            pad_ref[dy:dy + tH, dx:dx + W, :]
            .reshape(tH * W, Cmid).astype(jnp.bfloat16))
    feat = jnp.dot(col_ref[...], w2_ref[...],
                   preferred_element_type=jnp.float32)                        # (tH*W, G)

    # ---- fused concat([x, new_features], channel axis) ----
    out_ref[:, :, :Cin] = x_tile
    out_ref[:, :, Cin:] = feat.reshape(tH, W, G)


def dense_layer_forward(x_nchw, params, *, tile_h=None):
    """Pallas forward of _DenseLayer. x_nchw: (N, Cin, H, W) f32, NCHW like PyTorch."""
    N, Cin, H, W = x_nchw.shape
    (g1, b1, m1, v1, w1, g2, b2, m2, v2, w2) = params
    Cmid = w1.shape[0]          # bn_size * growth_rate
    G = w2.shape[0]             # growth_rate
    Cout = Cin + G

    if tile_h is None:
        tile_h = 8 if (H % 8 == 0 and H > 8) else H   # spatial tiling for pipelining
    assert H % tile_h == 0
    n_ht = H // tile_h

    # ---- wrapper glue: layout conversion + BN folding + weight re-layout ----
    # TODO(synk): for best end-to-end perf keep the surrounding network NHWC and
    # drop these transposes; they are only here to match the NCHW PyTorch API.
    x_nhwc = jnp.transpose(x_nchw, (0, 2, 3, 1)).astype(jnp.float32)

    inv1 = lax.rsqrt(v1.astype(jnp.float32) + EPS)
    scale1 = (g1 * inv1).reshape(1, Cin).astype(jnp.float32)
    shift1 = (b1 - m1 * g1 * inv1).reshape(1, Cin).astype(jnp.float32)

    inv2 = lax.rsqrt(v2.astype(jnp.float32) + EPS)
    scale2 = g2 * inv2                                                  # (Cmid,)
    bias2 = (b2 - m2 * scale2).reshape(1, Cmid).astype(jnp.float32)

    # BN2 scale folded into the 1x1 conv weight; bf16 for the MXU.
    w1_f = (w1.reshape(Cmid, Cin) * scale2[:, None]).T.astype(jnp.bfloat16)   # (Cin, Cmid)
    # 3x3 weight as im2col matrix, tap-major rows: row = (ky*3 + kx)*Cmid + c.
    w2_f = jnp.transpose(w2, (2, 3, 1, 0)).reshape(9 * Cmid, G).astype(jnp.bfloat16)

    flops = 2 * N * H * W * (Cin * Cmid + 9 * Cmid * G)
    bytes_accessed = 4 * (N * H * W * Cin + N * H * W * Cout) + 2 * (w1_f.size + w2_f.size)

    out_nhwc = pl.pallas_call(
        _dense_layer_kernel,
        out_shape=jax.ShapeDtypeStruct((N, H, W, Cout), jnp.float32),
        grid_spec=pltpu.PrefetchScalarGridSpec(
            num_scalar_prefetch=0,
            grid=(N, n_ht),
            in_specs=[
                pl.BlockSpec((None, H, W, Cin), lambda n, h: (n, 0, 0, 0)),   # x (resident across h)
                pl.BlockSpec((1, Cin), lambda n, h: (0, 0)),                  # scale1
                pl.BlockSpec((1, Cin), lambda n, h: (0, 0)),                  # shift1
                pl.BlockSpec((Cin, Cmid), lambda n, h: (0, 0)),               # w1 (BN2-folded, bf16)
                pl.BlockSpec((1, Cmid), lambda n, h: (0, 0)),                 # bias2
                pl.BlockSpec((9 * Cmid, G), lambda n, h: (0, 0)),             # w2 im2col (bf16)
            ],
            out_specs=pl.BlockSpec((None, tile_h, W, Cout), lambda n, h: (n, h, 0, 0)),
            scratch_shapes=[
                pltpu.VMEM((tile_h + 2, W + 2, Cmid), jnp.float32),           # padded a2 window
                pltpu.VMEM((tile_h * W, 9 * Cmid), jnp.bfloat16),             # im2col buffer (bf16)
            ],
        ),
        compiler_params=pltpu.CompilerParams(
            dimension_semantics=("parallel", "parallel"),
            vmem_limit_bytes=32 * 1024 * 1024,
        ),
        cost_estimate=pl.CostEstimate(flops=flops, transcendentals=0,
                                      bytes_accessed=bytes_accessed),
    )(x_nhwc, scale1, shift1, w1_f, bias2, w2_f)

    # Channel concat already done in-kernel; just return to PyTorch's NCHW layout.
    return jnp.transpose(out_nhwc, (0, 3, 1, 2))                              # (N, Cin+G, H, W)


def dense_layer_reference(x, params):
    """Plain-JAX (f32) reference mirroring the PyTorch module (inference-mode BN)."""
    (g1, b1, m1, v1, w1, g2, b2, m2, v2, w2) = params

    def bn(h, g, b, m, v):
        br = lambda p: p[None, :, None, None]
        return (h - br(m)) * lax.rsqrt(br(v) + EPS) * br(g) + br(b)

    dn = ("NCHW", "OIHW", "NCHW")
    h = jnp.maximum(bn(x, g1, b1, m1, v1), 0.0)
    h = lax.conv_general_dilated(h, w1, (1, 1), "VALID", dimension_numbers=dn)
    h = jnp.maximum(bn(h, g2, b2, m2, v2), 0.0)
    h = lax.conv_general_dilated(h, w2, (1, 1), ((1, 1), (1, 1)), dimension_numbers=dn)
    return jnp.concatenate([x, h], axis=1)


def make_params(key, in_channels, growth_rate, bn_size):
    cmid = bn_size * growth_rate
    ks = jax.random.split(key, 8)
    g1 = jax.random.uniform(ks[0], (in_channels,), jnp.float32, 0.5, 1.5)
    b1 = jax.random.normal(ks[1], (in_channels,), jnp.float32) * 0.1
    m1 = jax.random.normal(ks[2], (in_channels,), jnp.float32) * 0.1
    v1 = jax.random.uniform(ks[3], (in_channels,), jnp.float32, 0.5, 1.5)
    w1 = jax.random.normal(ks[4], (cmid, in_channels, 1, 1), jnp.float32) * 0.2
    g2 = jax.random.uniform(ks[5], (cmid,), jnp.float32, 0.5, 1.5)
    b2 = jax.random.normal(ks[6], (cmid,), jnp.float32) * 0.1
    m2 = jnp.zeros((cmid,), jnp.float32)
    v2 = jnp.ones((cmid,), jnp.float32)
    w2 = jax.random.normal(ks[7], (growth_rate, cmid, 3, 3), jnp.float32) * 0.1
    return (g1, b1, m1, v1, w1, g2, b2, m2, v2, w2)


if __name__ == "__main__":
    # _DenseLayer(spatial_dims=2, in_channels=4, growth_rate=4, bn_size=2, dropout_prob=0.0)
    N, Cin, H, W = 2, 4, 16, 16
    growth_rate, bn_size = 4, 2

    key = jax.random.PRNGKey(0)
    kx, kp = jax.random.split(key)
    x = jax.random.normal(kx, (N, Cin, H, W), jnp.float32)
    params = make_params(kp, Cin, growth_rate, bn_size)

    fwd = jax.jit(dense_layer_forward)
    out = jax.block_until_ready(fwd(x, params))
    ref = jax.block_until_ready(dense_layer_reference(x, params))

    assert out.shape == (N, Cin + growth_rate, H, W), out.shape
    # bf16 MXU operands with f32 accumulation -> looser tolerance than a pure-f32 path.
    assert jnp.allclose(out, ref, rtol=5e-2, atol=5e-2), float(jnp.max(jnp.abs(out - ref)))
    print("KERNEL_OK")
</pallas_src>

<mosaic_0001>
module attributes {stable_mosaic.version = 11 : i64} {
  func.func @_dense_layer_kernel(%arg0: i32, %arg1: i32, %arg2: memref<1x16x16x4xf32, #tpu.memory_space<vmem>>, %arg3: memref<1x4xf32, #tpu.memory_space<vmem>>, %arg4: memref<1x4xf32, #tpu.memory_space<vmem>>, %arg5: memref<4x8xbf16, #tpu.memory_space<vmem>>, %arg6: memref<1x8xf32, #tpu.memory_space<vmem>>, %arg7: memref<72x4xbf16, #tpu.memory_space<vmem>>, %arg8: memref<1x8x16x8xf32, #tpu.memory_space<vmem>>, %arg9: memref<10x18x8xf32, #tpu.memory_space<vmem>>, %arg10: memref<128x72xbf16, #tpu.memory_space<vmem>>) attributes {dimension_semantics = [#tpu.dimension_semantics<parallel>, #tpu.dimension_semantics<parallel>], iteration_bounds = array<i64: 2, 2>, scalar_prefetch = 0 : i64, scratch_operands = 2 : i64, tpu.core_type = #tpu.core_type<tc>, window_params = [{transform_indices = @transform_0, window_bounds = array<i64: 1, 16, 16, 4>}, {pipeline_mode = #tpu.pipeline_mode<synchronous>, transform_indices = @transform_1, window_bounds = array<i64: 1, 4>}, {pipeline_mode = #tpu.pipeline_mode<synchronous>, transform_indices = @transform_2, window_bounds = array<i64: 1, 4>}, {pipeline_mode = #tpu.pipeline_mode<synchronous>, transform_indices = @transform_3, window_bounds = array<i64: 4, 8>}, {pipeline_mode = #tpu.pipeline_mode<synchronous>, transform_indices = @transform_4, window_bounds = array<i64: 1, 8>}, {pipeline_mode = #tpu.pipeline_mode<synchronous>, transform_indices = @transform_5, window_bounds = array<i64: 72, 4>}, {transform_indices = @transform_6, window_bounds = array<i64: 1, 8, 16, 8>}]} {
    %c8_i32 = arith.constant 8 : i32
    %0 = arith.muli %arg1, %c8_i32 : i32
    %1 = tpu.assume_multiple %0, 8 : i32
    %c0 = arith.constant 0 : index
    %c0_0 = arith.constant 0 : index
    %2 = vector.load %arg3[%c0, %c0_0] : memref<1x4xf32, #tpu.memory_space<vmem>>, vector<1x4xf32>
    %c0_1 = arith.constant 0 : index
    %c0_2 = arith.constant 0 : index
    %3 = vector.load %arg4[%c0_1, %c0_2] : memref<1x4xf32, #tpu.memory_space<vmem>>, vector<1x4xf32>
    %c0_3 = arith.constant 0 : index
    %c0_4 = arith.constant 0 : index
    %4 = vector.load %arg6[%c0_3, %c0_4] : memref<1x8xf32, #tpu.memory_space<vmem>>, vector<1x8xf32>
    %c0_5 = arith.constant 0 : index
    %c0_6 = arith.constant 0 : index
    %5 = vector.load %arg5[%c0_5, %c0_6] : memref<4x8xbf16, #tpu.memory_space<vmem>>, vector<4x8xbf16>
    %c0_7 = arith.constant 0 : index
    %6 = arith.index_cast %1 : i32 to index
    %c0_8 = arith.constant 0 : index
    %c0_9 = arith.constant 0 : index
    %7 = vector.load %arg2[%c0_7, %6, %c0_8, %c0_9] : memref<1x16x16x4xf32, #tpu.memory_space<vmem>>, vector<1x8x16x4xf32>
    %8 = vector.shape_cast %7 : vector<1x8x16x4xf32> to vector<8x16x4xf32>
    %c1_i32 = arith.constant 1 : i32
    %9 = arith.subi %0, %c1_i32 : i32
    %c0_i32 = arith.constant 0 : i32
    %10 = arith.maxsi %9, %c0_i32 : i32
    %c8_i32_10 = arith.constant 8 : i32
    %11 = arith.addi %0, %c8_i32_10 : i32
    %c15_i32 = arith.constant 15 : i32
    %12 = arith.minsi %11, %c15_i32 : i32
    %c0_11 = arith.constant 0 : index
    %13 = arith.index_cast %10 : i32 to index
    %c0_12 = arith.constant 0 : index
    %c0_13 = arith.constant 0 : index
    %14 = vector.load %arg2[%c0_11, %13, %c0_12, %c0_13] : memref<1x16x16x4xf32, #tpu.memory_space<vmem>>, vector<1x1x16x4xf32>
    %15 = vector.shape_cast %14 : vector<1x1x16x4xf32> to vector<1x16x4xf32>
    %c0_14 = arith.constant 0 : index
    %16 = arith.index_cast %12 : i32 to index
    %c0_15 = arith.constant 0 : index
    %c0_16 = arith.constant 0 : index
    %17 = vector.load %arg2[%c0_14, %16, %c0_15, %c0_16] : memref<1x16x16x4xf32, #tpu.memory_space<vmem>>, vector<1x1x16x4xf32>
    %18 = vector.shape_cast %17 : vector<1x1x16x4xf32> to vector<1x16x4xf32>
    %19 = tpu.concatenate %15, %8, %18 in 0 : vector<1x16x4xf32>, vector<8x16x4xf32>, vector<1x16x4xf32> -> vector<10x16x4xf32>
    %20 = vector.shape_cast %19 : vector<10x16x4xf32> to vector<160x4xf32>
    %21 = vector.broadcast %2 : vector<1x4xf32> to vector<160x4xf32>
    %22 = arith.mulf %20, %21 : vector<160x4xf32>
    %23 = vector.broadcast %3 : vector<1x4xf32> to vector<160x4xf32>
    %24 = arith.addf %22, %23 : vector<160x4xf32>
    %cst = arith.constant 0.000000e+00 : f32
    %25 = vector.broadcast %cst : f32 to vector<160x4xf32>
    %26 = arith.maximumf %24, %25 : vector<160x4xf32>
    %27 = arith.truncf %26 : vector<160x4xf32> to vector<160x4xbf16>
    %cst_17 = arith.constant dense<0.000000e+00> : vector<160x8xf32>
    %28 = tpu.matmul %27, %5, %cst_17 {dimension_numbers = #tpu.dot_dimension_numbers<[1], [0], [0], [1], [0, 0, 1, 1], [], []>} : vector<160x4xbf16>, vector<4x8xbf16>, vector<160x8xf32> -> vector<160x8xf32>
    %29 = vector.broadcast %4 : vector<1x8xf32> to vector<160x8xf32>
    %30 = arith.addf %28, %29 : vector<160x8xf32>
    %cst_18 = arith.constant 0.000000e+00 : f32
    %31 = vector.broadcast %cst_18 : f32 to vector<160x8xf32>
    %32 = arith.maximumf %30, %31 : vector<160x8xf32>
    %33 = vector.shape_cast %32 : vector<160x8xf32> to vector<10x16x8xf32>
    %c1_i32_19 = arith.constant 1 : i32
    %34 = arith.cmpi sge, %0, %c1_i32_19 : i32
    %35 = arith.extui %34 : i1 to i32
    %36 = arith.sitofp %35 : i32 to f32
    %c8_i32_20 = arith.constant 8 : i32
    %37 = arith.addi %0, %c8_i32_20 : i32
    %c15_i32_21 = arith.constant 15 : i32
    %38 = arith.cmpi sle, %37, %c15_i32_21 : i32
    %39 = arith.extui %38 : i1 to i32
    %40 = arith.sitofp %39 : i32 to f32
    %41 = tpu.iota {dimensions = array<i32: 0>} : vector<10x1x1xi32>
    %c0_i32_22 = arith.constant 0 : i32
    %42 = vector.broadcast %c0_i32_22 : i32 to vector<10x1x1xi32>
    %43 = arith.cmpi eq, %41, %42 : vector<10x1x1xi32>
    %cst_23 = arith.constant 1.000000e+00 : f32
    %44 = vector.broadcast %36 : f32 to vector<10x1x1xf32>
    %45 = vector.broadcast %cst_23 : f32 to vector<10x1x1xf32>
    %46 = arith.select %43, %44, %45 : vector<10x1x1xi1>, vector<10x1x1xf32>
    %c9_i32 = arith.constant 9 : i32
    %47 = vector.broadcast %c9_i32 : i32 to vector<10x1x1xi32>
    %48 = arith.cmpi eq, %41, %47 : vector<10x1x1xi32>
    %cst_24 = arith.constant 1.000000e+00 : f32
    %49 = vector.broadcast %40 : f32 to vector<10x1x1xf32>
    %50 = vector.broadcast %cst_24 : f32 to vector<10x1x1xf32>
    %51 = arith.select %48, %49, %50 : vector<10x1x1xi1>, vector<10x1x1xf32>
    %52 = arith.mulf %46, %51 : vector<10x1x1xf32>
    %53 = vector.broadcast %52 : vector<10x1x1xf32> to vector<10x16x8xf32>
    %54 = arith.mulf %33, %53 : vector<10x16x8xf32>
    %cst_25 = arith.constant 0.000000e+00 : f32
    %55 = vector.broadcast %cst_25 : f32 to vector<10x1x8xf32>
    %c0_26 = arith.constant 0 : index
    %c0_27 = arith.constant 0 : index
    %c0_28 = arith.constant 0 : index
    %56 = vector.load %arg9[%c0_26, %c0_27, %c0_28] : memref<10x18x8xf32, #tpu.memory_space<vmem>>, vector<10x1x8xf32>
    tpu.vector_store %arg9[%c0_26, %c0_27, %c0_28], %55 {strides = array<i32>} : memref<10x18x8xf32, #tpu.memory_space<vmem>>, vector<10x1x8xf32>,
    %c0_29 = arith.constant 0 : index
    %c17 = arith.constant 17 : index
    %c0_30 = arith.constant 0 : index
    %57 = vector.load %arg9[%c0_29, %c17, %c0_30] : memref<10x18x8xf32, #tpu.memory_space<vmem>>, vector<10x1x8xf32>
    tpu.vector_store %arg9[%c0_29, %c17, %c0_30], %55 {strides = array<i32>} : memref<10x18x8xf32, #tpu.memory_space<vmem>>, vector<10x1x8xf32>,
    %c0_31 = arith.constant 0 : index
    %c1 = arith.constant 1 : index
    %c0_32 = arith.constant 0 : index
    %58 = vector.load %arg9[%c0_31, %c1, %c0_32] : memref<10x18x8xf32, #tpu.memory_space<vmem>>, vector<10x16x8xf32>
    tpu.vector_store %arg9[%c0_31, %c1, %c0_32], %54 {strides = array<i32>} : memref<10x18x8xf32, #tpu.memory_space<vmem>>, vector<10x16x8xf32>,
    %c0_33 = arith.constant 0 : index
    %c0_34 = arith.constant 0 : index
    %c0_35 = arith.constant 0 : index
    %59 = vector.load %arg9[%c0_33, %c0_34, %c0_35] : memref<10x18x8xf32, #tpu.memory_space<vmem>>, vector<8x16x8xf32>
    %60 = vector.shape_cast %59 : vector<8x16x8xf32> to vector<128x8xf32>
    %61 = arith.truncf %60 : vector<128x8xf32> to vector<128x8xbf16>
    %c0_36 = arith.constant 0 : index
    %c0_37 = arith.constant 0 : index
    %62 = vector.load %arg10[%c0_36, %c0_37] : memref<128x72xbf16, #tpu.memory_space<vmem>>, vector<128x8xbf16>
    tpu.vector_store %arg10[%c0_36, %c0_37], %61 {strides = array<i32>} : memref<128x72xbf16, #tpu.memory_space<vmem>>, vector<128x8xbf16>,
    %c0_38 = arith.constant 0 : index
    %c1_39 = arith.constant 1 : index
    %c0_40 = arith.constant 0 : index
    %63 = vector.load %arg9[%c0_38, %c1_39, %c0_40] : memref<10x18x8xf32, #tpu.memory_space<vmem>>, vector<8x16x8xf32>
    %64 = vector.shape_cast %63 : vector<8x16x8xf32> to vector<128x8xf32>
    %65 = arith.truncf %64 : vector<128x8xf32> to vector<128x8xbf16>
    %c0_41 = arith.constant 0 : index
    %c8 = arith.constant 8 : index
    %66 = vector.load %arg10[%c0_41, %c8] : memref<128x72xbf16, #tpu.memory_space<vmem>>, vector<128x8xbf16>
    tpu.vector_store %arg10[%c0_41, %c8], %65 {strides = array<i32>} : memref<128x72xbf16, #tpu.memory_space<vmem>>, vector<128x8xbf16>,
    %c0_42 = arith.constant 0 : index
    %c2 = arith.constant 2 : index
    %c0_43 = arith.constant 0 : index
    %67 = vector.load %arg9[%c0_42, %c2, %c0_43] : memref<10x18x8xf32, #tpu.memory_space<vmem>>, vector<8x16x8xf32>
    %68 = vector.shape_cast %67 : vector<8x16x8xf32> to vector<128x8xf32>
    %69 = arith.truncf %68 : vector<128x8xf32> to vector<128x8xbf16>
    %c0_44 = arith.constant 0 : index
    %c16 = arith.constant 16 : index
    %70 = vector.load %arg10[%c0_44, %c16] : memref<128x72xbf16, #tpu.memory_space<vmem>>, vector<128x8xbf16>
    tpu.vector_store %arg10[%c0_44, %c16], %69 {strides = array<i32>} : memref<128x72xbf16, #tpu.memory_space<vmem>>, vector<128x8xbf16>,
    %c1_45 = arith.constant 1 : index
    %c0_46 = arith.constant 0 : index
    %c0_47 = arith.constant 0 : index
    %71 = vector.load %arg9[%c1_45, %c0_46, %c0_47] : memref<10x18x8xf32, #tpu.memory_space<vmem>>, vector<8x16x8xf32>
    %72 = vector.shape_cast %71 : vector<8x16x8xf32> to vector<128x8xf32>
    %73 = arith.truncf %72 : vector<128x8xf32> to vector<128x8xbf16>
    %c0_48 = arith.constant 0 : index
    %c24 = arith.constant 24 : index
    %74 = vector.load %arg10[%c0_48, %c24] : memref<128x72xbf16, #tpu.memory_space<vmem>>, vector<128x8xbf16>
    tpu.vector_store %arg10[%c0_48, %c24], %73 {strides = array<i32>} : memref<128x72xbf16, #tpu.memory_space<vmem>>, vector<128x8xbf16>,
    %c1_49 = arith.constant 1 : index
    %c1_50 = arith.constant 1 : index
    %c0_51 = arith.constant 0 : index
    %75 = vector.load %arg9[%c1_49, %c1_50, %c0_51] : memref<10x18x8xf32, #tpu.memory_space<vmem>>, vector<8x16x8xf32>
    %76 = vector.shape_cast %75 : vector<8x16x8xf32> to vector<128x8xf32>
    %77 = arith.truncf %76 : vector<128x8xf32> to vector<128x8xbf16>
    %c0_52 = arith.constant 0 : index
    %c32 = arith.constant 32 : index
    %78 = vector.load %arg10[%c0_52, %c32] : memref<128x72xbf16, #tpu.memory_space<vmem>>, vector<128x8xbf16>
    tpu.vector_store %arg10[%c0_52, %c32], %77 {strides = array<i32>} : memref<128x72xbf16, #tpu.memory_space<vmem>>, vector<128x8xbf16>,
    %c1_53 = arith.constant 1 : index
    %c2_54 = arith.constant 2 : index
    %c0_55 = arith.constant 0 : index
    %79 = vector.load %arg9[%c1_53, %c2_54, %c0_55] : memref<10x18x8xf32, #tpu.memory_space<vmem>>, vector<8x16x8xf32>
    %80 = vector.shape_cast %79 : vector<8x16x8xf32> to vector<128x8xf32>
    %81 = arith.truncf %80 : vector<128x8xf32> to vector<128x8xbf16>
    %c0_56 = arith.constant 0 : index
    %c40 = arith.constant 40 : index
    %82 = vector.load %arg10[%c0_56, %c40] : memref<128x72xbf16, #tpu.memory_space<vmem>>, vector<128x8xbf16>
    tpu.vector_store %arg10[%c0_56, %c40], %81 {strides = array<i32>} : memref<128x72xbf16, #tpu.memory_space<vmem>>, vector<128x8xbf16>,
    %c2_57 = arith.constant 2 : index
    %c0_58 = arith.constant 0 : index
    %c0_59 = arith.constant 0 : index
    %83 = vector.load %arg9[%c2_57, %c0_58, %c0_59] : memref<10x18x8xf32, #tpu.memory_space<vmem>>, vector<8x16x8xf32>
    %84 = vector.shape_cast %83 : vector<8x16x8xf32> to vector<128x8xf32>
    %85 = arith.truncf %84 : vector<128x8xf32> to vector<128x8xbf16>
    %c0_60 = arith.constant 0 : index
    %c48 = arith.constant 48 : index
    %86 = vector.load %arg10[%c0_60, %c48] : memref<128x72xbf16, #tpu.memory_space<vmem>>, vector<128x8xbf16>
    tpu.vector_store %arg10[%c0_60, %c48], %85 {strides = array<i32>} : memref<128x72xbf16, #tpu.memory_space<vmem>>, vector<128x8xbf16>,
    %c2_61 = arith.constant 2 : index
    %c1_62 = arith.constant 1 : index
    %c0_63 = arith.constant 0 : index
    %87 = vector.load %arg9[%c2_61, %c1_62, %c0_63] : memref<10x18x8xf32, #tpu.memory_space<vmem>>, vector<8x16x8xf32>
    %88 = vector.shape_cast %87 : vector<8x16x8xf32> to vector<128x8xf32>
    %89 = arith.truncf %88 : vector<128x8xf32> to vector<128x8xbf16>
    %c0_64 = arith.constant 0 : index
    %c56 = arith.constant 56 : index
    %90 = vector.load %arg10[%c0_64, %c56] : memref<128x72xbf16, #tpu.memory_space<vmem>>, vector<128x8xbf16>
    tpu.vector_store %arg10[%c0_64, %c56], %89 {strides = array<i32>} : memref<128x72xbf16, #tpu.memory_space<vmem>>, vector<128x8xbf16>,
    %c2_65 = arith.constant 2 : index
    %c2_66 = arith.constant 2 : index
    %c0_67 = arith.constant 0 : index
    %91 = vector.load %arg9[%c2_65, %c2_66, %c0_67] : memref<10x18x8xf32, #tpu.memory_space<vmem>>, vector<8x16x8xf32>
    %92 = vector.shape_cast %91 : vector<8x16x8xf32> to vector<128x8xf32>
    %93 = arith.truncf %92 : vector<128x8xf32> to vector<128x8xbf16>
    %c0_68 = arith.constant 0 : index
    %c64 = arith.constant 64 : index
    %94 = vector.load %arg10[%c0_68, %c64] : memref<128x72xbf16, #tpu.memory_space<vmem>>, vector<128x8xbf16>
    tpu.vector_store %arg10[%c0_68, %c64], %93 {strides = array<i32>} : memref<128x72xbf16, #tpu.memory_space<vmem>>, vector<128x8xbf16>,
    %c0_69 = arith.constant 0 : index
    %c0_70 = arith.constant 0 : index
    %95 = vector.load %arg10[%c0_69, %c0_70] : memref<128x72xbf16, #tpu.memory_space<vmem>>, vector<128x72xbf16>
    %c0_71 = arith.constant 0 : index
    %c0_72 = arith.constant 0 : index
    %96 = vector.load %arg7[%c0_71, %c0_72] : memref<72x4xbf16, #tpu.memory_space<vmem>>, vector<72x4xbf16>
    %cst_73 = arith.constant dense<0.000000e+00> : vector<128x4xf32>
    %97 = tpu.matmul %95, %96, %cst_73 {dimension_numbers = #tpu.dot_dimension_numbers<[1], [0], [0], [1], [0, 0, 1, 1], [], []>} : vector<128x72xbf16>, vector<72x4xbf16>, vector<128x4xf32> -> vector<128x4xf32>
    %c0_74 = arith.constant 0 : index
    %c0_75 = arith.constant 0 : index
    %c0_76 = arith.constant 0 : index
    %c0_77 = arith.constant 0 : index
    %98 = vector.load %arg8[%c0_74, %c0_75, %c0_76, %c0_77] : memref<1x8x16x8xf32, #tpu.memory_space<vmem>>, vector<1x8x16x4xf32>
    %99 = vector.shape_cast %98 : vector<1x8x16x4xf32> to vector<8x16x4xf32>
    %100 = vector.shape_cast %8 : vector<8x16x4xf32> to vector<1x8x16x4xf32>
    tpu.vector_store %arg8[%c0_74, %c0_75, %c0_76, %c0_77], %100 {strides = array<i32>} : memref<1x8x16x8xf32, #tpu.memory_space<vmem>>, vector<1x8x16x4xf32>,
    %101 = vector.shape_cast %97 : vector<128x4xf32> to vector<8x16x4xf32>
    %c0_78 = arith.constant 0 : index
    %c0_79 = arith.constant 0 : index
    %c0_80 = arith.constant 0 : index
    %c4 = arith.constant 4 : index
    %102 = vector.load %arg8[%c0_78, %c0_79, %c0_80, %c4] : memref<1x8x16x8xf32, #tpu.memory_space<vmem>>, vector<1x8x16x4xf32>
    %103 = vector.shape_cast %102 : vector<1x8x16x4xf32> to vector<8x16x4xf32>
    %104 = vector.shape_cast %101 : vector<8x16x4xf32> to vector<1x8x16x4xf32>
    tpu.vector_store %arg8[%c0_78, %c0_79, %c0_80, %c4], %104 {strides = array<i32>} : memref<1x8x16x8xf32, #tpu.memory_space<vmem>>, vector<1x8x16x4xf32>,
    return
  }
  func.func @transform_0(%arg0: i32, %arg1: i32) -> (i32, i32, i32, i32) {
    %c0_i32 = arith.constant 0 : i32
    %c0_i32_0 = arith.constant 0 : i32
    %c0_i32_1 = arith.constant 0 : i32
    %c0_i32_2 = arith.constant 0 : i32
    return %arg0, %c0_i32, %c0_i32_0, %c0_i32_1 : i32, i32, i32, i32
  }
  func.func @transform_1(%arg0: i32, %arg1: i32) -> (i32, i32) {
    %c0_i32 = arith.constant 0 : i32
    %c0_i32_0 = arith.constant 0 : i32
    %c0_i32_1 = arith.constant 0 : i32
    return %c0_i32, %c0_i32_0 : i32, i32
  }
  func.func @transform_2(%arg0: i32, %arg1: i32) -> (i32, i32) {
    %c0_i32 = arith.constant 0 : i32
    %c0_i32_0 = arith.constant 0 : i32
    %c0_i32_1 = arith.constant 0 : i32
    return %c0_i32, %c0_i32_0 : i32, i32
  }
  func.func @transform_3(%arg0: i32, %arg1: i32) -> (i32, i32) {
    %c0_i32 = arith.constant 0 : i32
    %c0_i32_0 = arith.constant 0 : i32
    %c0_i32_1 = arith.constant 0 : i32
    return %c0_i32, %c0_i32_0 : i32, i32
  }
  func.func @transform_4(%arg0: i32, %arg1: i32) -> (i32, i32) {
    %c0_i32 = arith.constant 0 : i32
    %c0_i32_0 = arith.constant 0 : i32
    %c0_i32_1 = arith.constant 0 : i32
    return %c0_i32, %c0_i32_0 : i32, i32
  }
  func.func @transform_5(%arg0: i32, %arg1: i32) -> (i32, i32) {
    %c0_i32 = arith.constant 0 : i32
    %c0_i32_0 = arith.constant 0 : i32
    %c0_i32_1 = arith.constant 0 : i32
    return %c0_i32, %c0_i32_0 : i32, i32
  }
  func.func @transform_6(%arg0: i32, %arg1: i32) -> (i32, i32, i32, i32) {
    %c0_i32 = arith.constant 0 : i32
    %c0_i32_0 = arith.constant 0 : i32
    %c0_i32_1 = arith.constant 0 : i32
    return %arg0, %arg1, %c0_i32, %c0_i32_0 : i32, i32, i32, i32
  }
}

</mosaic_0001>

<bundles_post_ra>
// kernel: dense_layer_forward.1
= control target key start
LH: loop header
LB: loop body
LE: loop exit
PB: predicated region body
PF: predicated region fallthrough
CT: control target
= control target key end

     0   :  { %s1802_s21 = smov 0   ;;  %s1804_s22 = smov 0   ;;  %s2315_s0 = inlined_call_operand.vmem [shape: f32[2,16,16,4], index: 0, kind: input, shape index: {}]   ;;  %s2316_s1 = inlined_call_operand.vmem [shape: f32[1,4], index: 1, kind: input, shape index: {}]   ;;  %s2317_s2 = inlined_call_operand.vmem [shape: f32[1,4], index: 2, kind: input, shape index: {}]   ;;  %s2318_s3 = inlined_call_operand.vmem [shape: bf16[4,8], index: 3, kind: input, shape index: {}]   ;;  %s2319_s4 = inlined_call_operand.vmem [shape: f32[1,8], index: 4, kind: input, shape index: {}]   ;;  %s2320_s5 = inlined_call_operand.vmem [shape: bf16[72,4], index: 5, kind: input, shape index: {}]   ;;  %s2321_s6 = inlined_call_operand.vmem [shape: f32[2,16,16,8], index: 6, kind: output, shape index: {}]  }
   0x1   :  { %s1806_s23 = smov 0   ;;  %s1808_s24 = smov 0  }
   0x2   :  { %s1810_s25 = smov 0  }
   0x3 LB: > { %s25_s26 = sadd.s32 1, %s1747_s23  ;;  %s28_s27 = sadd.s32 1, %s1751_s24  ;;  %s1755_s25 = sphi %s1810_s25, %s16_s25   ;;  %s1751_s24 = sphi %s1808_s24, %s2326_s24   ;;  %s1747_s23 = sphi %s1806_s23, %s2325_s23   ;;  %s1743_s22 = sphi %s1804_s22, %s2324_s22   ;;  %s1739_s21 = sphi %s1802_s21, %s2323_s21  }
   0x4   : > { %p26_p0 = scmp.ge.s32.totalorder %s25_s26, 2  ;;  %p1546_p1 = scmp.ge.s32.totalorder %s1755_s25, 1 }
   0x5   : > { %p226_p2 = scmp.lt.s32.totalorder %s1755_s25, 5 }
   0x6   : > { %s2328_s26 = smov (%p26_p0, %s25_s26), 0  ;;  %s2330_s27 = smov (!%p26_p0, %s28_s27), %s1751_s24 }
   0x7   : > { %p227_p3 = pnand %p1546_p1, %p226_p2  ;;  %p30_p4 = scmp.ge.s32.totalorder %s2330_s27, 2 }
   0x8   : > { %v282_v0 = vld [vmem:[%s2318_s3] sm:$0x3] (!%p227_p3)  ;;  %vm434_vm0 = vcmask (!%p227_p3), 1041408   ;;  %p261_p5 = scmp.lt.s32.totalorder (!%p227_p3), %s1743_s22, 1  ;;  %s1838_s30 = sshll.u32 (!%p227_p3), %s1739_s21, 3  ;;  %vm403_vm1 = vcmask (!%p227_p3), 31744  }
   0x9   : > { %s2332_s27 = smov (%p30_p4, %s2330_s27), 0  ;;  %230 = sbr.rel (%p227_p3) target bundleno = 850 (0x352), region = 44 }
   0xa   : > { %1660 = vmatprep.subr.msk.bf16.mxu0 (!%p227_p3), %vm434_vm0, %v282_v0  ;;  %v436_v1 = vsel (!%p227_p3), %vm434_vm0, %v282_v0, 0  ;;  %p269_p6 = scmp.lt.s32.totalorder (!%p227_p3), %s1838_s30, 15  ;;  %v1850_v2 = vld [vmem:[%s2316_s1] ss:$0 sm:$0xff] (!%p227_p3)  ;;  %s1587_s17 = sshll.u32 (!%p227_p3), %s1739_s21, 7  ;;  %vm583_vm2 = vcmask (!%p227_p3), 57344  }
   0xb   : > { %1613 = vmatpush3.bf16.msra.mxu0 (!%p227_p3), %v436_v1  ;;  %v1864_v3 = vld [vmem:[%s2317_s2] ss:$0 sm:$0xff] (!%p227_p3)  ;;  %s1555_s21 = sadd.s32 (!%p227_p3), 4294967295, %s1838_s30  ;;  %s1942_s11 = sadd.s32 (!%p227_p3), 8, %s1838_s30  ;;  %vm604_vm3 = vcmask (!%p227_p3), 64512   ;;  %vm1248_vm4 = vcmask (!%p227_p3), 1043456  }
   0xc   : > { %p1870_p7 = scmp.gt.s32.totalorder (!%p227_p3), %s1555_s21, 0  ;;  %p305_p8 = scmp.lt.s32.totalorder (!%p227_p3), %s1942_s11, 15  ;;  %vm713_vm5 = vcmask (!%p227_p3), 130112   ;;  %vm778_vm6 = vcmask (!%p227_p3), 195712   ;;  %vm844_vm7 = vcmask (!%p227_p3), 261312   ;;  %vm909_vm8 = vcmask (!%p227_p3), 326912  }
   0xd   : > { %p571_p9 = scmp.ge.s32.totalorder (!%p227_p3), %s1838_s30, 1  ;;  %s1760_s20 = smov (!%p227_p3), 24   ;;  %vm974_vm9 = vcmask (!%p227_p3), 392512   ;;  %vm1040_vm10 = vcmask (!%p227_p3), 458112   ;;  %vm1105_vm11 = vcmask (!%p227_p3), 523712   ;;  %vm1170_vm12 = vcmask (!%p227_p3), 589312  }
   0xe   : > { %p574_p10 = scmp.le.s32.totalorder (!%p227_p3), %s1942_s11, 15  ;;  %s1761_s28 = smov (!%p227_p3), 32   ;;  %vm1223_vm13 = vcmask (!%p227_p3), 588800   ;;  %vm1429_vm14 = vcmask (!%p227_p3), 64544  }
   0xf   : > { %s1762_s29 = smov (!%p227_p3), 48  }
  0x10   : > { %s2334_s22 = smov (!%p261_p5, %s1743_s22), 1  ;;  %s2336_s21 = smov (!%p1870_p7, %s1555_s21), 0 }
  0x11   : > { %s270_s7 = scalar_select %p269_p6, %s1838_s30, 15 }
  0x12   : > { %s1586_s8 = sshll.u32 %s2334_s22, 8  ;;  %s1551_s9 = sshll.u32 %s2334_s22, 5 }
  0x13   : > { %s1845_s12 = scalar_lea.vmem %s2315_s0, %s1586_s8  ;;  %s1550_s13 = sshll.u32 %s270_s7, 1 }
  0x14   : > { %s273_s14 = sadd.s32 %s1551_s9, %s1550_s13  ;;  %s1854_s19 = scalar_lea.vmem %s1845_s12, %s1587_s17 }
  0x15   : > { %s1552_s18 = sshll.u32 %s273_s14, 3  ;;  %v285_v4 = vld [vmem:[%s1854_s19] sm:$0xff]  ;;  %v286_v5 = vld [vmem:[%s1854_s19 + $0x8] sm:$0xff]  ;;  %v287_v6 = vld [vmem:[%s1854_s19 + $0x10] sm:$0xff]  ;;  %s1556_s9 = sshll.u32 %s2336_s21, 4 }
  0x16   : > { %s1859_s22 = scalar_lea.vmem %s2321_s6, %s1552_s18  ;;  %v323_v7 = vmul.f32 %v1850_v2, %v285_v4  ;;  %v324_v8 = vmul.f32 %v1850_v2, %v286_v5  ;;  %v288_v9 = vld [vmem:[%s1854_s19 + $0x18] sm:$0xff]  ;;  %v289_v10 = vld [vmem:[%s1854_s19 + $0x20] sm:$0xff]  ;;  %v290_v11 = vld [vmem:[%s1854_s19 + $0x28] sm:$0xff]  ;;  %v325_v12 = vmul.f32 %v1850_v2, %v287_v6  ;;  %s308_s10 = scalar_lea.vmem %s1845_s12, %s1556_s9 }
  0x17   : > { %1349 = vst.msk [vmem:[%s1859_s22] sm:$0xff] %vm403_vm1, %v285_v4  ;;  %1350 = vst.msk [vmem:[%s1859_s22 + $0x8] sm:$0xff] %vm403_vm1, %v286_v5  ;;  %v326_v13 = vmul.f32 %v1850_v2, %v288_v9  ;;  %v291_v14 = vld [vmem:[%s1854_s19 + $0x30] sm:$0xff]  ;;  %v292_v15 = vld [vmem:[%s1854_s19 + $0x38] sm:$0xff]  ;;  %v327_v32 = vmul.f32 %v1850_v2, %v289_v10  ;;  %v328_v33 = vmul.f32 %v1850_v2, %v290_v11  ;;  %s306_s13 = scalar_select %p305_p8, %s1942_s11, 15 }
  0x18   : > { %1351 = vst.msk [vmem:[%s1859_s22 + $0x10] sm:$0xff] %vm403_vm1, %v287_v6  ;;  %1352 = vst.msk [vmem:[%s1859_s22 + $0x18] sm:$0xff] %vm403_vm1, %v288_v9  ;;  %v293_v16 = vld [vmem:[%s1854_s19 + $0x40] sm:$0xff]  ;;  %v294_v17 = vld [vmem:[%s1854_s19 + $0x48] sm:$0xff]  ;;  %v349_v23 = vadd.f32 %v1864_v3, %v323_v7  ;;  %v350_v24 = vadd.f32 %v1864_v3, %v324_v8  ;;  %v351_v26 = vadd.f32 %v1864_v3, %v325_v12  ;;  %s1758_s30 = smov 16   ;;  %s1763_s21 = smov 40  }
  0x19   : > { %1353 = vst.msk [vmem:[%s1859_s22 + $0x20] sm:$0xff] %vm403_vm1, %v289_v10  ;;  %1354 = vst.msk [vmem:[%s1859_s22 + $0x28] sm:$0xff] %vm403_vm1, %v290_v11  ;;  %v295_v18 = vld [vmem:[%s1854_s19 + $0x50] sm:$0xff]  ;;  %v296_v19 = vld [vmem:[%s1854_s19 + $0x58] sm:$0xff]  ;;  %v352_v27 = vadd.f32 %v1864_v3, %v326_v13  ;;  %v329_v36 = vmul.f32 %v1850_v2, %v291_v14  ;;  %v330_v37 = vmul.f32 %v1850_v2, %v292_v15  ;;  %s1557_s14 = sshll.u32 %s306_s13, 4  ;;  %s1764_s8 = smov 56  }
  0x1a   : > { %1355 = vst.msk [vmem:[%s1859_s22 + $0x30] sm:$0xff] %vm403_vm1, %v291_v14  ;;  %1356 = vst.msk [vmem:[%s1859_s22 + $0x38] sm:$0xff] %vm403_vm1, %v292_v15  ;;  %v297_v20 = vld [vmem:[%s1854_s19 + $0x60] sm:$0xff]  ;;  %v298_v21 = vld [vmem:[%s1854_s19 + $0x68] sm:$0xff]  ;;  %v369_v34 = vmax.f32 %v349_v23, 0.0  ;;  %v370_v35 = vmax.f32 %v350_v24, 0.0  ;;  %v353_v45 = vadd.f32 %v1864_v3, %v327_v32  ;;  %v354_v46 = vadd.f32 %v1864_v3, %v328_v33  ;;  %s312_s15 = scalar_lea.vmem %s1845_s12, %s1557_s14 }
  0x1b   : > { %1357 = vst.msk [vmem:[%s1859_s22 + $0x40] sm:$0xff] %vm403_vm1, %v293_v16  ;;  %1358 = vst.msk [vmem:[%s1859_s22 + $0x48] sm:$0xff] %vm403_vm1, %v294_v17  ;;  %v1916_v22 = vld [vmem:[%s1854_s19 + $0x70] sm:$0xff]  ;;  %v300_v25 = vld [vmem:[%s1854_s19 + $0x78] sm:$0xff]  ;;  %v371_v40 = vmax.f32 %v351_v26, 0.0  ;;  %v372_v41 = vmax.f32 %v352_v27, 0.0  ;;  %v355_v49 = vadd.f32 %v1864_v3, %v329_v36  ;;  %v356_v50 = vadd.f32 %v1864_v3, %v330_v37 }
  0x1c   : > { %1359 = vst.msk [vmem:[%s1859_s22 + $0x50] sm:$0xff] %vm403_vm1, %v295_v18  ;;  %1360 = vst.msk [vmem:[%s1859_s22 + $0x58] sm:$0xff] %vm403_vm1, %v296_v19  ;;  %v309_v28 = vld [vmem:[%s308_s10] sm:$0xff]  ;;  %v310_v29 = vld [vmem:[%s308_s10 + $0x8] sm:$0xff]  ;;  %v388_v44 = vpack.c.bf16 %v370_v35, %v369_v34  ;;  %v373_v51 = vmax.f32 %v353_v45, 0.0  ;;  %v374_v52 = vmax.f32 %v354_v46, 0.0  ;;  %v331_v53 = vmul.f32 %v1850_v2, %v293_v16 }
  0x1d   : > { %1361 = vst.msk [vmem:[%s1859_s22 + $0x60] sm:$0xff] %vm403_vm1, %v297_v20  ;;  %1362 = vst.msk [vmem:[%s1859_s22 + $0x68] sm:$0xff] %vm403_vm1, %v298_v21  ;;  %v321_v30 = vmul.f32 %v1850_v2, %v309_v28  ;;  %v322_v31 = vmul.f32 %v1850_v2, %v310_v29  ;;  %v389_v48 = vpack.c.bf16 %v372_v41, %v371_v40  ;;  %v375_v55 = vmax.f32 %v355_v49, 0.0  ;;  %s572_s12 = scalar_select %p571_p9, 1, 0 }
  0x1e   : > { %1363 = vst.msk [vmem:[%s1859_s22 + $0x70] sm:$0xff] %vm403_vm1, %v1916_v22  ;;  %1364 = vst.msk [vmem:[%s1859_s22 + $0x78] sm:$0xff] %vm403_vm1, %v300_v25  ;;  %v332_v54 = vmul.f32 %v1850_v2, %v294_v17  ;;  %v376_v56 = vmax.f32 %v356_v50, 0.0  ;;  %v333_v57 = vmul.f32 %v1850_v2, %v295_v18  ;;  %v334_v58 = vmul.f32 %v1850_v2, %v296_v19  ;;  %v313_v17 = vld [vmem:[%s312_s15] sm:$0xff]  ;;  %v314_v18 = vld [vmem:[%s312_s15 + $0x8] sm:$0xff]  ;;  %s1759_s19 = smov 8  }
  0x1f   : > { %v347_v38 = vadd.f32 %v1864_v3, %v321_v30  ;;  %v348_v39 = vadd.f32 %v1864_v3, %v322_v31  ;;  %v390_v59 = vpack.c.bf16 %v374_v52, %v373_v51  ;;  %v357_v60 = vadd.f32 %v1864_v3, %v331_v53  ;;  %s573_s18 = scvt.s32.f32 %s572_s12  ;;  %s1765_s13 = smov 64  }
  0x20   : > { %v358_v61 = vadd.f32 %v1864_v3, %v332_v54  ;;  %v391_v62 = vpack.c.bf16 %v376_v56, %v375_v55  ;;  %v359_v63 = vadd.f32 %v1864_v3, %v333_v57  ;;  %v360_v0 = vadd.f32 %v1864_v3, %v334_v58  ;;  %s2055_s7 = scalar_select %p574_p10, 1, 0 }
  0x21   : > { %v367_v42 = vmax.f32 %v347_v38, 0.0  ;;  %v368_v43 = vmax.f32 %v348_v39, 0.0  ;;  %v377_v1 = vmax.f32 %v357_v60, 0.0  ;;  %v335_v5 = vmul.f32 %v1850_v2, %v297_v20 }
  0x22   : > { %v378_v4 = vmax.f32 %v358_v61, 0.0  ;;  %v336_v6 = vmul.f32 %v1850_v2, %v298_v21  ;;  %v379_v7 = vmax.f32 %v359_v63, 0.0  ;;  %v380_v8 = vmax.f32 %v360_v0, 0.0  ;;  %s576_s9 = scvt.s32.f32 %s2055_s7 }
  0x23   : > { %v387_v47 = vpack.c.bf16 %v368_v43, %v367_v42  ;;  %v337_v9 = vmul.f32 %v1850_v2, %v1916_v22  ;;  %v338_v10 = vmul.f32 %v1850_v2, %v300_v25  ;;  %v361_v12 = vadd.f32 %v1864_v3, %v335_v5 }
  0x24   : > { %v392_v11 = vpack.c.bf16 %v378_v4, %v377_v1  ;;  %v362_v13 = vadd.f32 %v1864_v3, %v336_v6  ;;  %v393_v14 = vpack.c.bf16 %v380_v8, %v379_v7  ;;  %v339_v21 = vmul.f32 %v1850_v2, %v313_v17 }
  0x25   : > { %1614 = vmatprep.mubr.msk.bf16.mxu0 %vm403_vm1, %v387_v47  ;;  %v363_v15 = vadd.f32 %v1864_v3, %v337_v9  ;;  %v364_v16 = vadd.f32 %v1864_v3, %v338_v10  ;;  %v381_v19 = vmax.f32 %v361_v12, 0.0  ;;  %v340_v22 = vmul.f32 %v1850_v2, %v314_v18 }
  0x26   : > { %1615 = vmatmul.mubr.msk.bf16.vlgmr.msra.gmra.mrb[0].mxu0 %vm403_vm1, %v388_v44  ;;  %v382_v20 = vmax.f32 %v362_v13, 0.0  ;;  %v365_v26 = vadd.f32 %v1864_v3, %v339_v21  ;;  %v1757_v2 = vmov 0.0   ;;  %v577_v38 = vstv %s573_s18 }
  0x27   : > { %1618 = vmatprep.mubr.msk.bf16.mxu0 %vm403_vm1, %v389_v48  ;;  %v383_v23 = vmax.f32 %v363_v15, 0.0  ;;  %v384_v24 = vmax.f32 %v364_v16, 0.0  ;;  %v366_v27 = vadd.f32 %v1864_v3, %v340_v22  ;;  %595 = vst.msk [vmem:[#allocation2 + $0x29] sm:$0x1] %vm583_vm2, %v1757_v2  ;;  %584 = vst.msk [vmem:[#allocation2] sm:$0x1] %vm583_vm2, %v1757_v2 }
  0x28   : > { %v394_v25 = vpack.c.bf16 %v382_v20, %v381_v19  ;;  %v385_v29 = vmax.f32 %v365_v26, 0.0  ;;  %585 = vst.msk [vmem:[#allocation2 + $0x18] sm:$0x1] %vm583_vm2, %v1757_v2  ;;  %586 = vst.msk [vmem:[#allocation2 + $0x30] sm:$0x1] %vm583_vm2, %v1757_v2 }
  0x29   : > { %v395_v28 = vpack.c.bf16 %v384_v24, %v383_v23  ;;  %v386_v30 = vmax.f32 %v366_v27, 0.0  ;;  %587 = vst.msk [vmem:[#allocation2 + $0x48] sm:$0x1] %vm583_vm2, %v1757_v2  ;;  %588 = vst.msk [vmem:[#allocation2 + $0x60] sm:$0x1] %vm583_vm2, %v1757_v2 }
  0x2a   : > { %589 = vst.msk [vmem:[#allocation2 + $0x78] sm:$0x1] %vm583_vm2, %v1757_v2  ;;  %590 = vst.msk [vmem:[#allocation2 + $0x90] sm:$0x1] %vm583_vm2, %v1757_v2  ;;  %v2006_v3 = vld [vmem:[%s2319_s4] ss:$0 sm:$0xff] }
  0x2b   : > { %v396_v31 = vpack.c.bf16 %v386_v30, %v385_v29  ;;  %591 = vst.msk [vmem:[#allocation2 + $0xa8] sm:$0x1] %vm583_vm2, %v1757_v2  ;;  %592 = vst.msk [vmem:[#allocation2 + $0xc0] sm:$0x1] %vm583_vm2, %v1757_v2 }
  0x2c   : > { %593 = vst.msk [vmem:[#allocation2 + $0xd8] sm:$0x1] %vm583_vm2, %v1757_v2  ;;  %594 = vst.msk [vmem:[#allocation2 + $0x11] sm:$0x1] %vm583_vm2, %v1757_v2 }
  0x2d   : > { %596 = vst.msk [vmem:[#allocation2 + $0x41] sm:$0x1] %vm583_vm2, %v1757_v2  ;;  %597 = vst.msk [vmem:[#allocation2 + $0x59] sm:$0x1] %vm583_vm2, %v1757_v2 }
  0x2e   : > { %1619 = vmatmul.mubr.msk.bf16.gmra.mrb[4].mxu0 %vm403_vm1, %v390_v59  ;;  %598 = vst.msk [vmem:[#allocation2 + $0x71] sm:$0x1] %vm583_vm2, %v1757_v2  ;;  %599 = vst.msk [vmem:[#allocation2 + $0x89] sm:$0x1] %vm583_vm2, %v1757_v2 }
  0x2f   : > { %1622 = vmatprep.mubr.msk.bf16.mxu0 %vm403_vm1, %v391_v62  ;;  %600 = vst.msk [vmem:[#allocation2 + $0xa1] sm:$0x1] %vm583_vm2, %v1757_v2  ;;  %601 = vst.msk [vmem:[#allocation2 + $0xb9] sm:$0x1] %vm583_vm2, %v1757_v2 }
  0x30   : > { %602 = vst.msk [vmem:[#allocation2 + $0xd1] sm:$0x1] %vm583_vm2, %v1757_v2  ;;  %603 = vst.msk [vmem:[#allocation2 + $0xe9] sm:$0x1] %vm583_vm2, %v1757_v2 }
  0x36   : > { %1623 = vmatmul.mubr.msk.bf16.gmra.mrb[8].mxu0 %vm403_vm1, %v392_v11 }
  0x37   : > { %1626 = vmatprep.mubr.msk.bf16.mxu0 %vm403_vm1, %v393_v14 }
  0x3e   : > { %1627 = vmatmul.mubr.msk.bf16.gmra.mrb[12].mxu0 %vm403_vm1, %v394_v25 }
  0x3f   : > { %1630 = vmatprep.mubr.msk.bf16.mxu0 %vm403_vm1, %v395_v28 }
  0x46   : > { %1631 = vmatmul.mubr.msk.bf16.gmra.mrb[16].mxu0 %vm403_vm1, %v396_v31 }
  0xf9   : > { %v1616_v32 = vpop.f32.mrb[0].mxu0 }
  0xfa   : > { %v481_v33 = vadd.f32 %v1616_v32, %v2006_v3  ;;  %v472_v34 = vpop.f32.mrb[1].mxu0 }
  0xfb   : > { %v473_v35 = vadd.f32 %v2006_v3, %v472_v34  ;;  %v1617_v36 = vpop.f32.mrb[2].mxu0 }
  0xfc   : > { %v553_v37 = vmax.f32 %v481_v33, 0.0  ;;  %v484_v39 = vadd.f32 %v1617_v36, %v2006_v3  ;;  %v475_v40 = vpop.f32.mrb[3].mxu0 }
  0xfd   : > { %v551_v41 = vmax.f32 %v473_v35, 0.0  ;;  %v476_v42 = vadd.f32 %v2006_v3, %v475_v40 }
  0xfe   : > { %607 = vst.msk [vmem:[#allocation2 + $0x19] sm:$0xff] %vm604_vm3, %v553_v37  ;;  %v554_v43 = vmax.f32 %v484_v39, 0.0 }
  0xff   : > { %v579_v44 = vmul.f32 %v577_v38, %v551_v41  ;;  %v552_v45 = vmax.f32 %v476_v42, 0.0 }
 0x100   : > { %608 = vst.msk [vmem:[#allocation2 + $0x21] sm:$0xff] %vm604_vm3, %v554_v43 }
 0x101   : > { %605 = vst.msk [vmem:[#allocation2 + $0x1] sm:$0xff] %vm604_vm3, %v579_v44  ;;  %v580_v46 = vmul.f32 %v577_v38, %v552_v45  ;;  %v1620_v47 = vpop.f32.mrb[4].mxu0 }
 0x102   : > { %v497_v48 = vadd.f32 %v1620_v47, %v2006_v3  ;;  %v488_v49 = vpop.f32.mrb[5].mxu0 }
 0x103   : > { %606 = vst.msk [vmem:[#allocation2 + $0x9] sm:$0xff] %vm604_vm3, %v580_v46  ;;  %v489_v50 = vadd.f32 %v2006_v3, %v488_v49  ;;  %v1621_v51 = vpop.f32.mrb[6].mxu0 }
 0x104   : > { %v557_v52 = vmax.f32 %v497_v48, 0.0  ;;  %v500_v53 = vadd.f32 %v1621_v51, %v2006_v3  ;;  %v491_v54 = vpop.f32.mrb[7].mxu0 }
 0x105   : > { %v555_v55 = vmax.f32 %v489_v50, 0.0  ;;  %v492_v56 = vadd.f32 %v2006_v3, %v491_v54  ;;  %v659_v58 = vld [vmem:[#allocation2 + $0x19] sm:$0xff] }
 0x106   : > { %611 = vst.msk [vmem:[#allocation2 + $0x49] sm:$0xff] %vm604_vm3, %v557_v52  ;;  %v558_v57 = vmax.f32 %v500_v53, 0.0  ;;  %v788_v1 = vld [vmem:[#allocation2 + $0x18] sm:$0xff] }
 0x107   : > { %609 = vst.msk [vmem:[#allocation2 + $0x31] sm:$0xff] %vm604_vm3, %v555_v55  ;;  %v556_v59 = vmax.f32 %v492_v56, 0.0  ;;  %v724_v60 = vld [vmem:[#allocation2 + $0x1a] sm:$0xff]  ;;  %v725_v61 = vld [vmem:[#allocation2 + $0x22] sm:$0xff] }
 0x108   : > { %v660_v62 = vld [vmem:[#allocation2 + $0x21] sm:$0xff]  ;;  %612 = vst.msk [vmem:[#allocation2 + $0x51] sm:$0xff] %vm604_vm3, %v558_v57  ;;  %v2023_v63 = vpack.c.bf16 %v725_v61, %v724_v60 }
 0x109   : > { %v674_v0 = vpack.c.bf16 %v660_v62, %v659_v58  ;;  %v789_v4 = vld [vmem:[#allocation2 + $0x20] sm:$0xff]  ;;  %610 = vst.msk [vmem:[#allocation2 + $0x39] sm:$0xff] %vm604_vm3, %v556_v59  ;;  %v1624_v6 = vpop.f32.mrb[8].mxu0  ;;  %v578_v58 = vstv %s576_s9 }
 0x10a   : > { %v804_v5 = vpack.c.bf16 %v789_v4, %v788_v1  ;;  %756 = vrot.lane.b32.xlu1 %v2023_v63, %s1758_s30  ;;  %v722_v7 = vld [vmem:[#allocation2 + $0x2] sm:$0xff]  ;;  %v723_v8 = vld [vmem:[#allocation2 + $0xa] sm:$0xff]  ;;  %v513_v9 = vadd.f32 %v1624_v6, %v2006_v3  ;;  %v504_v10 = vpop.f32.mrb[9].mxu0 }
 0x10b   : > { %691 = vrot.lane.b32.xlu0 %v674_v0, %s1759_s19  ;;  %v738_v11 = vpack.c.bf16 %v723_v8, %v722_v7  ;;  %v505_v12 = vadd.f32 %v2006_v3, %v504_v10  ;;  %v1625_v13 = vpop.f32.mrb[10].mxu0  ;;  %v625_v14 = vld [vmem:[#allocation2] sm:$0xff]  ;;  %v626_v15 = vld [vmem:[#allocation2 + $0x8] sm:$0xff] }
 0x10c   : > { %650 = vst.msk [vmem:[#allocation3 + $0x8] sm:$0xff] %vm604_vm3, %v804_v5  ;;  %v561_v16 = vmax.f32 %v513_v9, 0.0  ;;  %v516_v17 = vadd.f32 %v1625_v13, %v2006_v3  ;;  %v507_v18 = vpop.f32.mrb[11].mxu0  ;;  %v641_v19 = vpack.c.bf16 %v626_v15, %v625_v14  ;;  %v658_v40 = vld [vmem:[#allocation2 + $0x9] sm:$0xff]  ;;  %v657_v46 = vld [vmem:[#allocation2 + $0x1] sm:$0xff] }
 0x10d   : > { %v986_v20 = vld [vmem:[#allocation2 + $0x48] sm:$0xff]  ;;  %v559_v21 = vmax.f32 %v505_v12, 0.0  ;;  %v508_v22 = vadd.f32 %v2006_v3, %v507_v18  ;;  %v673_v49 = vpack.c.bf16 %v658_v40, %v657_v46  ;;  %v1712_v6 = vld [vmem:[%s2320_s5] sm:$0xff]  }
 0x10e   : > { %754 = vrot.lane.b32.xlu1 %v738_v11, %s1758_s30  ;;  %615 = vst.msk [vmem:[#allocation2 + $0x79] sm:$0xff] %vm604_vm3, %v561_v16  ;;  %v562_v23 = vmax.f32 %v516_v17, 0.0  ;;  %649 = vst.msk [vmem:[#allocation3] sm:$0xff] %vm604_vm3, %v641_v19  ;;  %v790_v27 = vld [vmem:[#allocation2 + $0x30] sm:$0xff]  ;;  %1634 = vmatprep.subr.bf16.mxu1 %v1712_v6  ;;  %v1713_v16 = vld [vmem:[%s2320_s5 + $0x8] sm:$0xff]  }
 0x10f   : > { %820 = vrot.lane.b32.xlu0 %v804_v5, %s1760_s20  ;;  %v987_v24 = vld [vmem:[#allocation2 + $0x50] sm:$0xff]  ;;  %613 = vst.msk [vmem:[#allocation2 + $0x61] sm:$0xff] %vm604_vm3, %v559_v21  ;;  %v560_v25 = vmax.f32 %v508_v22, 0.0  ;;  %1635 = vmatpush3.bf16.msra.mxu1 %v1712_v6 }
 0x110   : > { %v2040_v26 = vpack.c.bf16 %v987_v24, %v986_v20  ;;  %616 = vst.msk [vmem:[#allocation2 + $0x81] sm:$0xff] %vm604_vm3, %v562_v23  ;;  %v791_v28 = vld [vmem:[#allocation2 + $0x38] sm:$0xff]  ;;  %v1051_v29 = vld [vmem:[#allocation2 + $0x49] sm:$0xff]  ;;  %1636 = vmatprep.subr.bf16.mxu1 %v1713_v16  ;;  %v1716_v24 = vld [vmem:[%s2320_s5 + $0x20] ss:$0 sps:$4 sm:$0xff]  }
 0x111   : > { %v1052_v30 = vld [vmem:[#allocation2 + $0x51] sm:$0xff]  ;;  %614 = vst.msk [vmem:[#allocation2 + $0x69] sm:$0xff] %vm604_vm3, %v560_v25  ;;  %v2044_v31 = vpack.c.bf16 %v791_v28, %v790_v27  ;;  %v1628_v2 = vpop.f32.mrb[12].mxu0  ;;  %v856_v14 = vld [vmem:[#allocation2 + $0x39] sm:$0xff]  ;;  %v1250_v25 = vsel %vm1248_vm4, %v1716_v24, 0 }
 0x112   : > { %1018 = vrot.lane.b32.xlu1 %v2040_v26, %s1762_s29  ;;  %v529_v32 = vadd.f32 %v1628_v2, %v2006_v3  ;;  %v520_v33 = vpop.f32.mrb[13].mxu0  ;;  %652 = vst.msk [vmem:[#allocation3 + $0x18] sm:$0xff] %vm604_vm3, %v2040_v26  ;;  %v2059_v36 = vpack.c.bf16 %v1052_v30, %v1051_v29  ;;  %v728_v52 = vld [vmem:[#allocation2 + $0x4a] sm:$0xff]  ;;  %v729_v53 = vld [vmem:[#allocation2 + $0x52] sm:$0xff]  ;;  %v921_v20 = vld [vmem:[#allocation2 + $0x3a] sm:$0xff] }
 0x113   : > { %885 = vrot.lane.b32.xlu0 %v674_v0, %s1761_s28  ;;  %v521_v34 = vadd.f32 %v2006_v3, %v520_v33  ;;  %v1629_v35 = vpop.f32.mrb[14].mxu0  ;;  %651 = vst.msk [vmem:[#allocation3 + $0x10] sm:$0xff] %vm604_vm3, %v2044_v31  ;;  %v741_v61 = vpack.c.bf16 %v729_v53, %v728_v52  ;;  %v855_v17 = vld [vmem:[#allocation2 + $0x31] sm:$0xff]  ;;  %1637 = vmatpush3.bf16.msra.mxu1 %v1713_v16 }
 0x114   : > { %v565_v37 = vmax.f32 %v529_v32, 0.0  ;;  %v532_v38 = vadd.f32 %v1629_v35, %v2006_v3  ;;  %v523_v39 = vpop.f32.mrb[15].mxu0  ;;  %v870_v18 = vpack.c.bf16 %v856_v14, %v855_v17  ;;  %v920_v19 = vld [vmem:[#allocation2 + $0x32] sm:$0xff] }
 0x115   : > { %v990_v41 = vld [vmem:[#allocation2 + $0x78] sm:$0xff]  ;;  %v563_v42 = vmax.f32 %v521_v34, 0.0  ;;  %v524_v43 = vadd.f32 %v2006_v3, %v523_v39  ;;  %v1714_v21 = vld [vmem:[%s2320_s5 + $0x10] sm:$0xff]   ;;  %v935_v22 = vpack.c.bf16 %v921_v20, %v920_v19 }
 0x116   : > { %1083 = vrot.lane.b32.xlu1 %v2059_v36, %s1764_s8  ;;  %619 = vst.msk [vmem:[#allocation2 + $0xa9] sm:$0xff] %vm604_vm3, %v565_v37  ;;  %v566_v44 = vmax.f32 %v532_v38, 0.0  ;;  %v794_v45 = vld [vmem:[#allocation2 + $0x60] sm:$0xff]  ;;  %1638 = vmatprep.subr.bf16.mxu1 %v1714_v21  ;;  %v1715_v23 = vld [vmem:[%s2320_s5 + $0x18] sm:$0xff]  }
 0x117   : > { %950 = vrot.lane.b32.xlu0 %v2023_v63, %s1763_s21  ;;  %v991_v47 = vld [vmem:[#allocation2 + $0x80] sm:$0xff]  ;;  %617 = vst.msk [vmem:[#allocation2 + $0x91] sm:$0xff] %vm604_vm3, %v563_v42  ;;  %v564_v48 = vmax.f32 %v524_v43, 0.0  ;;  %1639 = vmatpush3.bf16.msra.mxu1 %v1714_v21 }
 0x118   : > { %v2070_v50 = vpack.c.bf16 %v991_v47, %v990_v41  ;;  %620 = vst.msk [vmem:[#allocation2 + $0xb1] sm:$0xff] %vm604_vm3, %v566_v44  ;;  %v795_v51 = vld [vmem:[#allocation2 + $0x68] sm:$0xff]  ;;  %1640 = vmatprep.subr.bf16.mxu1 %v1715_v23  ;;  %v732_v29 = vld [vmem:[#allocation2 + $0x7a] sm:$0xff] }
 0x119   : > { %618 = vst.msk [vmem:[#allocation2 + $0x99] sm:$0xff] %vm604_vm3, %v564_v48  ;;  %v2074_v54 = vpack.c.bf16 %v795_v51, %v794_v45  ;;  %v1632_v55 = vpop.f32.mrb[16].mxu0  ;;  %v1056_v27 = vld [vmem:[#allocation2 + $0x81] sm:$0xff]  ;;  %v860_v32 = vld [vmem:[#allocation2 + $0x69] sm:$0xff] }
 0x11a   : > { %695 = vrot.lane.b32.xlu1 %v2059_v36, %s1759_s19  ;;  %v545_v56 = vadd.f32 %v1632_v55, %v2006_v3  ;;  %v536_v57 = vpop.f32.mrb[17].mxu0  ;;  %654 = vst.msk [vmem:[#allocation3 + $0x28] sm:$0xff] %vm604_vm3, %v2070_v50  ;;  %v733_v30 = vld [vmem:[#allocation2 + $0x82] sm:$0xff]  ;;  %v925_v35 = vld [vmem:[#allocation2 + $0x6a] sm:$0xff] }
 0x11b   : > { %689 = vrot.lane.b32.xlu0 %v673_v49, %s1759_s19  ;;  %v537_v59 = vadd.f32 %v2006_v3, %v536_v57  ;;  %v1633_v60 = vpop.f32.mrb[18].mxu0  ;;  %653 = vst.msk [vmem:[#allocation3 + $0x20] sm:$0xff] %vm604_vm3, %v2074_v54  ;;  %1641 = vmatpush3.bf16.msra.mxu1 %v1715_v23  ;;  %v859_v2 = vld [vmem:[#allocation2 + $0x61] sm:$0xff] }
 0x11c   : > { %v569_v62 = vmax.f32 %v545_v56, 0.0  ;;  %v548_v63 = vadd.f32 %v1633_v60, %v2006_v3  ;;  %v539_v0 = vpop.f32.mrb[19].mxu0  ;;  %1661 = vmatprep.subr.msk.bf16.mxu1 %vm1248_vm4, %v1716_v24  ;;  %v872_v33 = vpack.c.bf16 %v860_v32, %v859_v2  ;;  %v924_v34 = vld [vmem:[#allocation2 + $0x62] sm:$0xff] }
 0x11d   : > { %v994_v1 = vld [vmem:[#allocation2 + $0xa8] sm:$0xff]  ;;  %v567_v4 = vmax.f32 %v537_v59, 0.0  ;;  %v540_v5 = vadd.f32 %v2006_v3, %v539_v0 }
 0x11e   : > { %760 = vrot.lane.b32.xlu1 %v741_v61, %s1758_s30  ;;  %v581_v7 = vmul.f32 %v578_v58, %v569_v62  ;;  %v570_v8 = vmax.f32 %v548_v63, 0.0  ;;  %v798_v9 = vld [vmem:[#allocation2 + $0x90] sm:$0xff] }
 0x11f   : > { %1148 = vrot.lane.b32.xlu0 %v741_v61, %s1765_s13  ;;  %v995_v10 = vld [vmem:[#allocation2 + $0xb0] sm:$0xff]  ;;  %621 = vst.msk [vmem:[#allocation2 + $0xc1] sm:$0xff] %vm604_vm3, %v567_v4  ;;  %v568_v11 = vmax.f32 %v540_v5, 0.0  ;;  %1643 = vmatpush3.bf16.msra.mxu1 %v1250_v25 }
 0x120   : > { %v2093_v12 = vpack.c.bf16 %v995_v10, %v994_v1  ;;  %623 = vst.msk [vmem:[#allocation2 + $0xd9] sm:$0xff] %vm604_vm3, %v581_v7  ;;  %v582_v3 = vmul.f32 %v578_v58, %v570_v8  ;;  %v799_v13 = vld [vmem:[#allocation2 + $0x98] sm:$0xff]  ;;  %v1059_v37 = vld [vmem:[#allocation2 + $0xa9] sm:$0xff] }
 0x121   : > { %622 = vst.msk [vmem:[#allocation2 + $0xc9] sm:$0xff] %vm604_vm3, %v568_v11  ;;  %v2097_v15 = vpack.c.bf16 %v799_v13, %v798_v9  ;;  %v1060_v38 = vld [vmem:[#allocation2 + $0xb1] sm:$0xff]  ;;  %v864_v44 = vld [vmem:[#allocation2 + $0x99] sm:$0xff] }
 0x122   : > { %822 = vrot.lane.b32.xlu1 %v2044_v31, %s1760_s20  ;;  %624 = vst.msk [vmem:[#allocation2 + $0xe1] sm:$0xff] %vm604_vm3, %v582_v3  ;;  %656 = vst.msk [vmem:[#allocation3 + $0x38] sm:$0xff] %vm604_vm3, %v2093_v12  ;;  %v1070_v39 = vpack.c.bf16 %v1060_v38, %v1059_v37  ;;  %v736_v40 = vld [vmem:[#allocation2 + $0xaa] sm:$0xff]  ;;  %v737_v41 = vld [vmem:[#allocation2 + $0xb2] sm:$0xff] }
 0x123   : > { %824 = vrot.lane.b32.xlu0 %v2040_v26, %s1760_s20  ;;  %655 = vst.msk [vmem:[#allocation3 + $0x30] sm:$0xff] %vm604_vm3, %v2097_v15  ;;  %v1055_v26 = vld [vmem:[#allocation2 + $0x79] sm:$0xff]  ;;  %v745_v42 = vpack.c.bf16 %v737_v41, %v736_v40  ;;  %v863_v43 = vld [vmem:[#allocation2 + $0x91] sm:$0xff] }
 0x124   : > { %v1068_v28 = vpack.c.bf16 %v1056_v27, %v1055_v26  ;;  %v874_v45 = vpack.c.bf16 %v864_v44, %v863_v43  ;;  %v928_v46 = vld [vmem:[#allocation2 + $0x92] sm:$0xff]  ;;  %v929_v47 = vld [vmem:[#allocation2 + $0x9a] sm:$0xff] }
 0x125   : > { %v939_v48 = vpack.c.bf16 %v929_v47, %v928_v46 }
 0x126   : > { %887 = vrot.lane.b32.xlu1 %v870_v18, %s1761_s28  ;;  %v802_v49 = vld [vmem:[#allocation2 + $0xc0] sm:$0xff] }
 0x127   : > { %889 = vrot.lane.b32.xlu0 %v2059_v36, %s1761_s28  ;;  %v937_v36 = vpack.c.bf16 %v925_v35, %v924_v34  ;;  %v867_v52 = vld [vmem:[#allocation2 + $0xc1] sm:$0xff]  ;;  %v998_v58 = vld [vmem:[#allocation2 + $0xd8] sm:$0xff] }
 0x128   : > { %v868_v53 = vld [vmem:[#allocation2 + $0xc9] sm:$0xff]  ;;  %v1063_v63 = vld [vmem:[#allocation2 + $0xd9] sm:$0xff] }
 0x129   : > { %v932_v55 = vld [vmem:[#allocation2 + $0xc2] sm:$0xff]  ;;  %v933_v56 = vld [vmem:[#allocation2 + $0xca] sm:$0xff]  ;;  %v1128_v6 = vld [vmem:[#allocation2 + $0xda] sm:$0xff] }
 0x12a   : > { %952 = vrot.lane.b32.xlu1 %v935_v22, %s1763_s21  ;;  %v941_v57 = vpack.c.bf16 %v933_v56, %v932_v55  ;;  %v999_v59 = vld [vmem:[#allocation2 + $0xe0] sm:$0xff] }
 0x12b   : > { %954 = vrot.lane.b32.xlu0 %v741_v61, %s1763_s21  ;;  %v1007_v62 = vpack.c.bf16 %v999_v59, %v998_v58  ;;  %v1064_v0 = vld [vmem:[#allocation2 + $0xe1] sm:$0xff] }
 0x12c   : > { %v1072_v5 = vpack.c.bf16 %v1064_v0, %v1063_v63  ;;  %v1129_v7 = vld [vmem:[#allocation2 + $0xe2] sm:$0xff] }
 0x12d   : > { %v1137_v10 = vpack.c.bf16 %v1129_v7, %v1128_v6 }
 0x12e   : > { %693 = vrot.lane.b32.xlu1 %v870_v18, %s1759_s19 }
 0x12f   : > { %1016 = vrot.lane.b32.xlu0 %v2044_v31, %s1762_s29  ;;  %v743_v31 = vpack.c.bf16 %v733_v30, %v732_v29 }
 0x132   : > { %1022 = vrot.lane.b32.xlu1 %v2070_v50, %s1762_s29 }
 0x133   : > { %1081 = vrot.lane.b32.xlu0 %v870_v18, %s1764_s8 }
 0x136   : > { %1087 = vrot.lane.b32.xlu1 %v1068_v28, %s1764_s8 }
 0x137   : > { %1146 = vrot.lane.b32.xlu0 %v935_v22, %s1765_s13 }
 0x13a   : > { %699 = vrot.lane.b32.xlu1 %v1068_v28, %s1759_s19 }
 0x13b   : > { %758 = vrot.lane.b32.xlu0 %v935_v22, %s1758_s30 }
 0x13e   : > { %764 = vrot.lane.b32.xlu1 %v743_v31, %s1758_s30 }
 0x13f   : > { %1152 = vrot.lane.b32.xlu0 %v743_v31, %s1765_s13 }
 0x142   : > { %826 = vrot.lane.b32.xlu1 %v2074_v54, %s1760_s20 }
 0x143   : > { %828 = vrot.lane.b32.xlu0 %v2070_v50, %s1760_s20  ;;  %v803_v50 = vld [vmem:[#allocation2 + $0xc8] sm:$0xff] }
 0x144   : > { %v811_v51 = vpack.c.bf16 %v803_v50, %v802_v49 }
 0x146   : > { %891 = vrot.lane.b32.xlu1 %v872_v33, %s1761_s28 }
 0x147   : > { %893 = vrot.lane.b32.xlu0 %v1068_v28, %s1761_s28 }
 0x14a   : > { %956 = vrot.lane.b32.xlu1 %v937_v36, %s1763_s21 }
 0x14b   : > { %958 = vrot.lane.b32.xlu0 %v743_v31, %s1763_s21 }
 0x14e   : > { %697 = vrot.lane.b32.xlu1 %v872_v33, %s1759_s19 }
 0x14f   : > { %1020 = vrot.lane.b32.xlu0 %v2074_v54, %s1762_s29  ;;  %v876_v54 = vpack.c.bf16 %v868_v53, %v867_v52 }
 0x152   : > { %1026 = vrot.lane.b32.xlu1 %v2093_v12, %s1762_s29 }
 0x153   : > { %1085 = vrot.lane.b32.xlu0 %v872_v33, %s1764_s8 }
 0x156   : > { %1091 = vrot.lane.b32.xlu1 %v1070_v39, %s1764_s8 }
 0x157   : > { %1150 = vrot.lane.b32.xlu0 %v937_v36, %s1765_s13 }
 0x15a   : > { %703 = vrot.lane.b32.xlu1 %v1070_v39, %s1759_s19 }
 0x15b   : > { %762 = vrot.lane.b32.xlu0 %v937_v36, %s1758_s30 }
 0x15e   : > { %768 = vrot.lane.b32.xlu1 %v745_v42, %s1758_s30 }
 0x15f   : > { %1156 = vrot.lane.b32.xlu0 %v745_v42, %s1765_s13 }
 0x162   : > { %830 = vrot.lane.b32.xlu1 %v2097_v15, %s1760_s20 }
 0x163   : > { %832 = vrot.lane.b32.xlu0 %v2093_v12, %s1760_s20 }
 0x166   : > { %895 = vrot.lane.b32.xlu1 %v874_v45, %s1761_s28 }
 0x167   : > { %897 = vrot.lane.b32.xlu0 %v1070_v39, %s1761_s28 }
 0x16a   : > { %960 = vrot.lane.b32.xlu1 %v939_v48, %s1763_s21 }
 0x16b   : > { %962 = vrot.lane.b32.xlu0 %v745_v42, %s1763_s21 }
 0x16e   : > { %701 = vrot.lane.b32.xlu1 %v874_v45, %s1759_s19 }
 0x16f   : > { %1024 = vrot.lane.b32.xlu0 %v2097_v15, %s1762_s29 }
 0x172   : > { %834 = vrot.lane.b32.xlu1 %v811_v51, %s1760_s20 }
 0x173   : > { %1089 = vrot.lane.b32.xlu0 %v874_v45, %s1764_s8 }
 0x176   : > { %899 = vrot.lane.b32.xlu1 %v876_v54, %s1761_s28 }
 0x177   : > { %1154 = vrot.lane.b32.xlu0 %v939_v48, %s1765_s13 }
 0x17a   : > { %964 = vrot.lane.b32.xlu1 %v941_v57, %s1763_s21 }
 0x17b   : > { %766 = vrot.lane.b32.xlu0 %v939_v48, %s1758_s30  ;;  %s1766_s30 = smov 4  }
 0x17c   : > { %v757_v60 = vpop.permute.xlu1 %756 }
 0x17d   : > { %v692_v61 = vpop.permute.xlu0 %691 }
 0x17e   : > { %715 = vst.msk [vmem:[#allocation3 + $0x8] sm:$0xff] %vm713_vm5, %v692_v61  ;;  %1030 = vrot.lane.b32.xlu1 %v1007_v62, %s1762_s29 }
 0x17f   : > { %1028 = vrot.lane.b32.xlu0 %v811_v51, %s1762_s29  ;;  %780 = vst.msk [vmem:[#allocation3 + $0x8] sm:$0xff] %vm778_vm6, %v757_v60 }
 0x180   : > { %v755_v4 = vpop.permute.xlu1 %754 }
 0x181   : > { %v821_v1 = vpop.permute.xlu0 %820 }
 0x182   : > { %1095 = vrot.lane.b32.xlu1 %v1072_v5, %s1764_s8 }
 0x183   : > { %1093 = vrot.lane.b32.xlu0 %v876_v54, %s1764_s8 }
 0x184   : > { %v1019_v9 = vpop.permute.xlu1 %1018 }
 0x185   : > { %v886_v8 = vpop.permute.xlu0 %885 }
 0x186   : > { %1160 = vrot.lane.b32.xlu1 %v1137_v10, %s1765_s13 }
 0x187   : > { %1158 = vrot.lane.b32.xlu0 %v941_v57, %s1765_s13 }
 0x188   : > { %v1084_v12 = vpop.permute.xlu1 %1083 }
 0x189   : > { %v951_v11 = vpop.permute.xlu0 %950 }
 0x18c   : > { %v696_v3 = vpop.permute.xlu1 %695 }
 0x18d   : > { %v690_v13 = vpop.permute.xlu0 %689  ;;  %717 = vst.msk [vmem:[#allocation3 + $0x18] sm:$0xff] %vm713_vm5, %v696_v3 }
 0x18e   : > { %714 = vst.msk [vmem:[#allocation3] sm:$0xff] %vm713_vm5, %v690_v13 }
 0x18f   : > { %779 = vst.msk [vmem:[#allocation3] sm:$0xff] %vm778_vm6, %v755_v4 }
 0x190   : > { %845 = vst.msk [vmem:[#allocation3] sm:$0xff] %vm844_vm7, %v821_v1  ;;  %v761_v14 = vpop.permute.xlu1 %760 }
 0x191   : > { %v1149_v15 = vpop.permute.xlu0 %1148  ;;  %910 = vst.msk [vmem:[#allocation3] sm:$0xff] %vm909_vm8, %v886_v8 }
 0x192   : > { %782 = vst.msk [vmem:[#allocation3 + $0x18] sm:$0xff] %vm778_vm6, %v761_v14 }
 0x193   : > { %975 = vst.msk [vmem:[#allocation3] sm:$0xff] %vm974_vm9, %v951_v11 }
 0x194   : > { %v823_v16 = vpop.permute.xlu1 %822 }
 0x195   : > { %v825_v17 = vpop.permute.xlu0 %824  ;;  %846 = vst.msk [vmem:[#allocation3 + $0x8] sm:$0xff] %vm844_vm7, %v823_v16 }
 0x198   : > { %v888_v18 = vpop.permute.xlu1 %887 }
 0x199   : > { %v890_v19 = vpop.permute.xlu0 %889  ;;  %911 = vst.msk [vmem:[#allocation3 + $0x8] sm:$0xff] %vm909_vm8, %v888_v18 }
 0x19c   : > { %v953_v20 = vpop.permute.xlu1 %952 }
 0x19d   : > { %v955_v21 = vpop.permute.xlu0 %954  ;;  %976 = vst.msk [vmem:[#allocation3 + $0x8] sm:$0xff] %vm974_vm9, %v953_v20 }
 0x19e   : > { %1042 = vst.msk [vmem:[#allocation3 + $0x8] sm:$0xff] %vm1040_vm10, %v1019_v9 }
 0x19f   : > { %1107 = vst.msk [vmem:[#allocation3 + $0x8] sm:$0xff] %vm1105_vm11, %v1084_v12 }
 0x1a0   : > { %1172 = vst.msk [vmem:[#allocation3 + $0x8] sm:$0xff] %vm1170_vm12, %v1149_v15  ;;  %v694_v22 = vpop.permute.xlu1 %693 }
 0x1a1   : > { %v1017_v23 = vpop.permute.xlu0 %1016  ;;  %716 = vst.msk [vmem:[#allocation3 + $0x10] sm:$0xff] %vm713_vm5, %v694_v22 }
 0x1a2   : > { %1041 = vst.msk [vmem:[#allocation3] sm:$0xff] %vm1040_vm10, %v1017_v23 }
 0x1a4   : > { %v1023_v24 = vpop.permute.xlu1 %1022 }
 0x1a5   : > { %v1082_v25 = vpop.permute.xlu0 %1081 }
 0x1a6   : > { %1106 = vst.msk [vmem:[#allocation3] sm:$0xff] %vm1105_vm11, %v1082_v25 }
 0x1a7   : > { %v1180_v32 = vld [vmem:[#allocation3 + $0x8] sm:$0xff] }
 0x1a8   : > { %v1088_v26 = vpop.permute.xlu1 %1087 }
 0x1a9   : > { %v1147_v27 = vpop.permute.xlu0 %1146 }
 0x1aa   : > { %1171 = vst.msk [vmem:[#allocation3] sm:$0xff] %vm1170_vm12, %v1147_v27 }
 0x1ac   : > { %v700_v28 = vpop.permute.xlu1 %699 }
 0x1ad   : > { %v759_v29 = vpop.permute.xlu0 %758  ;;  %719 = vst.msk [vmem:[#allocation3 + $0x28] sm:$0xff] %vm713_vm5, %v700_v28 }
 0x1ae   : > { %781 = vst.msk [vmem:[#allocation3 + $0x10] sm:$0xff] %vm778_vm6, %v759_v29 }
 0x1af   : > { %847 = vst.msk [vmem:[#allocation3 + $0x10] sm:$0xff] %vm844_vm7, %v825_v17 }
 0x1b0   : > { %912 = vst.msk [vmem:[#allocation3 + $0x10] sm:$0xff] %vm909_vm8, %v890_v19  ;;  %v765_v30 = vpop.permute.xlu1 %764 }
 0x1b1   : > { %977 = vst.msk [vmem:[#allocation3 + $0x10] sm:$0xff] %vm974_vm9, %v955_v21  ;;  %v1153_v31 = vpop.permute.xlu0 %1152  ;;  %v1179_v2 = vld [vmem:[#allocation3] sm:$0xff] }
 0x1b2   : > { %784 = vst.msk [vmem:[#allocation3 + $0x28] sm:$0xff] %vm778_vm6, %v765_v30  ;;  %1644 = vmatprep.mubr.msk.bf16.mxu1 %vm1223_vm13, %v1179_v2 }
 0x1b3   : > { %1645 = vmatmul.mubr.msk.bf16.vlgmr.msra.gmra.mrb[0].mxu1 %vm1223_vm13, %v1180_v32 }
 0x1b4   : > { %v827_v33 = vpop.permute.xlu1 %826 }
 0x1b5   : > { %v829_v34 = vpop.permute.xlu0 %828  ;;  %848 = vst.msk [vmem:[#allocation3 + $0x18] sm:$0xff] %vm844_vm7, %v827_v33 }
 0x1b8   : > { %v892_v35 = vpop.permute.xlu1 %891 }
 0x1b9   : > { %v894_v36 = vpop.permute.xlu0 %893  ;;  %913 = vst.msk [vmem:[#allocation3 + $0x18] sm:$0xff] %vm909_vm8, %v892_v35 }
 0x1bc   : > { %v957_v37 = vpop.permute.xlu1 %956 }
 0x1bd   : > { %v959_v38 = vpop.permute.xlu0 %958  ;;  %978 = vst.msk [vmem:[#allocation3 + $0x18] sm:$0xff] %vm974_vm9, %v957_v37 }
 0x1be   : > { %1044 = vst.msk [vmem:[#allocation3 + $0x18] sm:$0xff] %vm1040_vm10, %v1023_v24 }
 0x1bf   : > { %1109 = vst.msk [vmem:[#allocation3 + $0x18] sm:$0xff] %vm1105_vm11, %v1088_v26 }
 0x1c0   : > { %1174 = vst.msk [vmem:[#allocation3 + $0x18] sm:$0xff] %vm1170_vm12, %v1153_v31  ;;  %v698_v39 = vpop.permute.xlu1 %697 }
 0x1c1   : > { %v1021_v40 = vpop.permute.xlu0 %1020  ;;  %718 = vst.msk [vmem:[#allocation3 + $0x20] sm:$0xff] %vm713_vm5, %v698_v39 }
 0x1c2   : > { %1043 = vst.msk [vmem:[#allocation3 + $0x10] sm:$0xff] %vm1040_vm10, %v1021_v40 }
 0x1c4   : > { %v1027_v41 = vpop.permute.xlu1 %1026 }
 0x1c5   : > { %v1086_v42 = vpop.permute.xlu0 %1085 }
 0x1c6   : > { %1108 = vst.msk [vmem:[#allocation3 + $0x10] sm:$0xff] %vm1105_vm11, %v1086_v42 }
 0x1c7   : > { %v1182_v50 = vld [vmem:[#allocation3 + $0x18] sm:$0xff] }
 0x1c8   : > { %v1092_v43 = vpop.permute.xlu1 %1091 }
 0x1c9   : > { %v1151_v44 = vpop.permute.xlu0 %1150 }
 0x1ca   : > { %1173 = vst.msk [vmem:[#allocation3 + $0x10] sm:$0xff] %vm1170_vm12, %v1151_v44 }
 0x1cc   : > { %v704_v45 = vpop.permute.xlu1 %703 }
 0x1cd   : > { %v763_v46 = vpop.permute.xlu0 %762  ;;  %721 = vst.msk [vmem:[#allocation3 + $0x38] sm:$0xff] %vm713_vm5, %v704_v45 }
 0x1ce   : > { %783 = vst.msk [vmem:[#allocation3 + $0x20] sm:$0xff] %vm778_vm6, %v763_v46 }
 0x1cf   : > { %849 = vst.msk [vmem:[#allocation3 + $0x20] sm:$0xff] %vm844_vm7, %v829_v34 }
 0x1d0   : > { %914 = vst.msk [vmem:[#allocation3 + $0x20] sm:$0xff] %vm909_vm8, %v894_v36  ;;  %v769_v47 = vpop.permute.xlu1 %768 }
 0x1d1   : > { %979 = vst.msk [vmem:[#allocation3 + $0x20] sm:$0xff] %vm974_vm9, %v959_v38  ;;  %v1157_v48 = vpop.permute.xlu0 %1156  ;;  %v1181_v49 = vld [vmem:[#allocation3 + $0x10] sm:$0xff] }
 0x1d2   : > { %786 = vst.msk [vmem:[#allocation3 + $0x38] sm:$0xff] %vm778_vm6, %v769_v47  ;;  %1648 = vmatprep.mubr.msk.bf16.mxu1 %vm1223_vm13, %v1181_v49 }
 0x1d3   : > { %1649 = vmatmul.mubr.msk.bf16.gmra.mrb[4].mxu1 %vm1223_vm13, %v1182_v50 }
 0x1d4   : > { %v831_v51 = vpop.permute.xlu1 %830 }
 0x1d5   : > { %v833_v52 = vpop.permute.xlu0 %832  ;;  %850 = vst.msk [vmem:[#allocation3 + $0x28] sm:$0xff] %vm844_vm7, %v831_v51 }
 0x1d8   : > { %v896_v53 = vpop.permute.xlu1 %895 }
 0x1d9   : > { %v898_v54 = vpop.permute.xlu0 %897  ;;  %915 = vst.msk [vmem:[#allocation3 + $0x28] sm:$0xff] %vm909_vm8, %v896_v53 }
 0x1dc   : > { %v961_v55 = vpop.permute.xlu1 %960 }
 0x1dd   : > { %v963_v56 = vpop.permute.xlu0 %962  ;;  %980 = vst.msk [vmem:[#allocation3 + $0x28] sm:$0xff] %vm974_vm9, %v961_v55 }
 0x1de   : > { %1046 = vst.msk [vmem:[#allocation3 + $0x28] sm:$0xff] %vm1040_vm10, %v1027_v41 }
 0x1df   : > { %1111 = vst.msk [vmem:[#allocation3 + $0x28] sm:$0xff] %vm1105_vm11, %v1092_v43 }
 0x1e0   : > { %1176 = vst.msk [vmem:[#allocation3 + $0x28] sm:$0xff] %vm1170_vm12, %v1157_v48  ;;  %v702_v57 = vpop.permute.xlu1 %701 }
 0x1e1   : > { %v1025_v58 = vpop.permute.xlu0 %1024  ;;  %720 = vst.msk [vmem:[#allocation3 + $0x30] sm:$0xff] %vm713_vm5, %v702_v57 }
 0x1e2   : > { %1045 = vst.msk [vmem:[#allocation3 + $0x20] sm:$0xff] %vm1040_vm10, %v1025_v58 }
 0x1e4   : > { %v835_v59 = vpop.permute.xlu1 %834 }
 0x1e5   : > { %v1090_v60 = vpop.permute.xlu0 %1089  ;;  %852 = vst.msk [vmem:[#allocation3 + $0x38] sm:$0xff] %vm844_vm7, %v835_v59 }
 0x1e6   : > { %1110 = vst.msk [vmem:[#allocation3 + $0x20] sm:$0xff] %vm1105_vm11, %v1090_v60 }
 0x1e7   : > { %v1184_v6 = vld [vmem:[#allocation3 + $0x28] sm:$0xff] }
 0x1e8   : > { %v900_v61 = vpop.permute.xlu1 %899 }
 0x1e9   : > { %v1155_v62 = vpop.permute.xlu0 %1154  ;;  %917 = vst.msk [vmem:[#allocation3 + $0x38] sm:$0xff] %vm909_vm8, %v900_v61 }
 0x1ea   : > { %1175 = vst.msk [vmem:[#allocation3 + $0x20] sm:$0xff] %vm1170_vm12, %v1155_v62 }
 0x1ec   : > { %v965_v63 = vpop.permute.xlu1 %964 }
 0x1ed   : > { %v767_v0 = vpop.permute.xlu0 %766  ;;  %982 = vst.msk [vmem:[#allocation3 + $0x38] sm:$0xff] %vm974_vm9, %v965_v63 }
 0x1ee   : > { %785 = vst.msk [vmem:[#allocation3 + $0x30] sm:$0xff] %vm778_vm6, %v767_v0 }
 0x1ef   : > { %851 = vst.msk [vmem:[#allocation3 + $0x30] sm:$0xff] %vm844_vm7, %v833_v52 }
 0x1f0   : > { %916 = vst.msk [vmem:[#allocation3 + $0x30] sm:$0xff] %vm909_vm8, %v898_v54  ;;  %v1031_v1 = vpop.permute.xlu1 %1030 }
 0x1f1   : > { %981 = vst.msk [vmem:[#allocation3 + $0x30] sm:$0xff] %vm974_vm9, %v963_v56  ;;  %v1029_v4 = vpop.permute.xlu0 %1028  ;;  %v1183_v5 = vld [vmem:[#allocation3 + $0x20] sm:$0xff] }
 0x1f2   : > { %1048 = vst.msk [vmem:[#allocation3 + $0x38] sm:$0xff] %vm1040_vm10, %v1031_v1  ;;  %1047 = vst.msk [vmem:[#allocation3 + $0x30] sm:$0xff] %vm1040_vm10, %v1029_v4  ;;  %1652 = vmatprep.mubr.msk.bf16.mxu1 %vm1223_vm13, %v1183_v5 }
 0x1f3   : > { %1653 = vmatmul.mubr.msk.bf16.gmra.mrb[8].mxu1 %vm1223_vm13, %v1184_v6 }
 0x1f4   : > { %v1096_v7 = vpop.permute.xlu1 %1095 }
 0x1f5   : > { %v1094_v8 = vpop.permute.xlu0 %1093  ;;  %1113 = vst.msk [vmem:[#allocation3 + $0x38] sm:$0xff] %vm1105_vm11, %v1096_v7 }
 0x1f6   : > { %1112 = vst.msk [vmem:[#allocation3 + $0x30] sm:$0xff] %vm1105_vm11, %v1094_v8 }
 0x1f8   : > { %v1161_v9 = vpop.permute.xlu1 %1160 }
 0x1f9   : > { %v1159_v10 = vpop.permute.xlu0 %1158  ;;  %1178 = vst.msk [vmem:[#allocation3 + $0x38] sm:$0xff] %vm1170_vm12, %v1161_v9 }
 0x1fa   : > { %1177 = vst.msk [vmem:[#allocation3 + $0x30] sm:$0xff] %vm1170_vm12, %v1159_v10 }
 0x200   : > { %v1186_v12 = vld [vmem:[#allocation3 + $0x38] sm:$0xff] }
 0x201   : > { %v1185_v11 = vld [vmem:[#allocation3 + $0x30] sm:$0xff] }
 0x202   : > { %1656 = vmatprep.mubr.msk.bf16.mxu1 %vm1223_vm13, %v1185_v11 }
 0x203   : > { %1657 = vmatmul.mubr.msk.bf16.gmra.mrb[12].mxu1 %vm1223_vm13, %v1186_v12 }
 0x286   : > { %v1646_v3 = vpop.f32.mrb[0].mxu1 }
 0x287   : > { %1385 = vrot.lane.b32.xlu0 %v1646_v3, %s1766_s30  ;;  %v1286_v13 = vpop.f32.mrb[1].mxu1 }
 0x288   : > { %v1647_v14 = vpop.f32.mrb[2].mxu1 }
 0x289   : > { %1387 = vrot.lane.b32.xlu1 %v1647_v14, %s1766_s30  ;;  %v1289_v15 = vpop.f32.mrb[3].mxu1 }
 0x28b   : > { %1381 = vrot.lane.b32.xlu0 %v1286_v13, %s1766_s30 }
 0x28d   : > { %1383 = vrot.lane.b32.xlu1 %v1289_v15, %s1766_s30 }
 0x2a6   : > { %v1650_v16 = vpop.f32.mrb[4].mxu1 }
 0x2a7   : > { %1393 = vrot.lane.b32.xlu0 %v1650_v16, %s1766_s30  ;;  %v1302_v17 = vpop.f32.mrb[5].mxu1 }
 0x2a8   : > { %v1651_v18 = vpop.f32.mrb[6].mxu1 }
 0x2a9   : > { %1395 = vrot.lane.b32.xlu1 %v1651_v18, %s1766_s30  ;;  %v1305_v19 = vpop.f32.mrb[7].mxu1 }
 0x2ab   : > { %1389 = vrot.lane.b32.xlu0 %v1302_v17, %s1766_s30 }
 0x2ad   : > { %1391 = vrot.lane.b32.xlu1 %v1305_v19, %s1766_s30 }
 0x2c6   : > { %v1654_v20 = vpop.f32.mrb[8].mxu1 }
 0x2c7   : > { %1401 = vrot.lane.b32.xlu0 %v1654_v20, %s1766_s30  ;;  %v1318_v21 = vpop.f32.mrb[9].mxu1 }
 0x2c8   : > { %v1655_v22 = vpop.f32.mrb[10].mxu1 }
 0x2c9   : > { %1403 = vrot.lane.b32.xlu1 %v1655_v22, %s1766_s30  ;;  %v1321_v23 = vpop.f32.mrb[11].mxu1 }
 0x2cb   : > { %1397 = vrot.lane.b32.xlu0 %v1318_v21, %s1766_s30 }
 0x2cd   : > { %1399 = vrot.lane.b32.xlu1 %v1321_v23, %s1766_s30 }
 0x2d6   : > { %v1658_v24 = vpop.f32.mrb[12].mxu1 }
 0x2d7   : > { %v1334_v25 = vpop.f32.mrb[13].mxu1 }
 0x2d8   : > { %1405 = vrot.lane.b32.xlu0 %v1334_v25, %s1766_s30  ;;  %v1659_v26 = vpop.f32.mrb[14].mxu1 }
 0x2d9   : > { %v1337_v27 = vpop.f32.mrb[15].mxu1 }
 0x2da   : > { %1407 = vrot.lane.b32.xlu1 %v1337_v27, %s1766_s30 }
 0x2dc   : > { %1409 = vrot.lane.b32.xlu0 %v1658_v24, %s1766_s30 }
 0x2de   : > { %1411 = vrot.lane.b32.xlu1 %v1659_v26, %s1766_s30 }
 0x2f9   : > { %v1386_v28 = vpop.permute.xlu0 %1385 }
 0x2fa   : > { %1432 = vst.msk [vmem:[%s1859_s22 + $0x10] sm:$0xff] %vm1429_vm14, %v1386_v28 }
 0x2fb   : > { %v1388_v29 = vpop.permute.xlu1 %1387 }
 0x2fc   : > { %1433 = vst.msk [vmem:[%s1859_s22 + $0x18] sm:$0xff] %vm1429_vm14, %v1388_v29 }
 0x2fd   : > { %v1382_v30 = vpop.permute.xlu0 %1381 }
 0x2fe   : > { %1430 = vst.msk [vmem:[%s1859_s22] sm:$0xff] %vm1429_vm14, %v1382_v30 }
 0x2ff   : > { %v1384_v31 = vpop.permute.xlu1 %1383 }
 0x300   : > { %1431 = vst.msk [vmem:[%s1859_s22 + $0x8] sm:$0xff] %vm1429_vm14, %v1384_v31 }
 0x319   : > { %v1394_v2 = vpop.permute.xlu0 %1393 }
 0x31a   : > { %1436 = vst.msk [vmem:[%s1859_s22 + $0x30] sm:$0xff] %vm1429_vm14, %v1394_v2 }
 0x31b   : > { %v1396_v32 = vpop.permute.xlu1 %1395 }
 0x31c   : > { %1437 = vst.msk [vmem:[%s1859_s22 + $0x38] sm:$0xff] %vm1429_vm14, %v1396_v32 }
 0x31d   : > { %v1390_v33 = vpop.permute.xlu0 %1389 }
 0x31e   : > { %1434 = vst.msk [vmem:[%s1859_s22 + $0x20] sm:$0xff] %vm1429_vm14, %v1390_v33 }
 0x31f   : > { %v1392_v34 = vpop.permute.xlu1 %1391 }
 0x320   : > { %1435 = vst.msk [vmem:[%s1859_s22 + $0x28] sm:$0xff] %vm1429_vm14, %v1392_v34 }
 0x339   : > { %v1402_v35 = vpop.permute.xlu0 %1401 }
 0x33a   : > { %1440 = vst.msk [vmem:[%s1859_s22 + $0x50] sm:$0xff] %vm1429_vm14, %v1402_v35 }
 0x33b   : > { %v1404_v36 = vpop.permute.xlu1 %1403 }
 0x33c   : > { %1441 = vst.msk [vmem:[%s1859_s22 + $0x58] sm:$0xff] %vm1429_vm14, %v1404_v36 }
 0x33d   : > { %v1398_v37 = vpop.permute.xlu0 %1397 }
 0x33e   : > { %1438 = vst.msk [vmem:[%s1859_s22 + $0x40] sm:$0xff] %vm1429_vm14, %v1398_v37 }
 0x33f   : > { %v1400_v38 = vpop.permute.xlu1 %1399 }
 0x340   : > { %1439 = vst.msk [vmem:[%s1859_s22 + $0x48] sm:$0xff] %vm1429_vm14, %v1400_v38 }
 0x34a   : > { %v1406_v39 = vpop.permute.xlu0 %1405 }
 0x34b   : > { %1442 = vst.msk [vmem:[%s1859_s22 + $0x60] sm:$0xff] %vm1429_vm14, %v1406_v39 }
 0x34c   : > { %v1408_v40 = vpop.permute.xlu1 %1407 }
 0x34d   : > { %1443 = vst.msk [vmem:[%s1859_s22 + $0x68] sm:$0xff] %vm1429_vm14, %v1408_v40 }
 0x34e   : > { %v1410_v41 = vpop.permute.xlu0 %1409 }
 0x34f   : > { %1444 = vst.msk [vmem:[%s1859_s22 + $0x70] sm:$0xff] %vm1429_vm14, %v1410_v41 }
 0x350   : > { %v1412_v42 = vpop.permute.xlu1 %1411 }
 0x351   : > { %1445 = vst.msk [vmem:[%s1859_s22 + $0x78] sm:$0xff] %vm1429_vm14, %v1412_v42 }
 0x352 PF: > { %s16_s25 = sadd.s32 1, %s1755_s25   ;;  %s2323_s21 = smov %s1747_s23 }
 0x353   : > { %p13_p11 = scmp.ge.s32.totalorder %s16_s25, 6   ;;  %s2324_s22 = smov %s1751_s24 }
 0x354   : > { %s2325_s23 = smov %s2328_s26  ;;  %s2326_s24 = smov %s2332_s27 }
 0x355   :  { %15 = sbr.rel (!%p13_p11) target bundleno = 3 (0x3), region = 79 }

</bundles_post_ra>
